<compile_context>
chip_gen: v7x
topology: tpu7x:2x2x1
jax: 0.10.0
libtpu: 0.0.40
codegen_flags: <defaults>
</compile_context>

<pallas_src>
import numpy as np
import jax
import jax.numpy as jnp
from jax.experimental import pallas as pl

# ---- static config (small synthetic shapes consistent with the module) -----
B         = 2
GRID      = 2                     # 3-D grid -> 2*2*2 = 8 spatial tokens
L_SPACE   = GRID ** 3
L         = L_SPACE + 1           # +1 CLS-position slot (pos_embed has num_tokens=1)
LV        = 5                     # visible tokens per batch element
LN_TOK    = L - LV                # masked tokens per batch element
ENC_DIM   = 16                    # encoder dim (in/out of CompletionNet)
EMB_DIM   = 24                    # decoder embed dim (divisible by 6 and by num_heads)
DEPTH     = 2
N_HEADS   = 4
D_HEAD    = EMB_DIM // N_HEADS
MLP_HID   = EMB_DIM * 4
SCALE     = float(D_HEAD) ** -0.5
LN_EPS    = 1e-6
BL        = B * L                 # folded token axis
HBL       = N_HEADS * BL          # heads folded into the score lane axis

VEC_W     = MLP_HID               # widest packed 1-D parameter (fc1 bias)
NV_STEM   = 6                     # in_norm w/b, in_linear b, out_norm w/b, out_linear b
NV_BLK    = 8                     # n1w, n1b, n3w, n3b, qkv_b, proj_b, fc1_b, fc2_b
NV_ROWS   = NV_STEM + NV_BLK * DEPTH

GELU_C    = 0.7978845608028654    # sqrt(2/pi)


# ---------------------------------------------------------------------------
# Pallas kernel: whole forward, single invocation (no grid), everything in VMEM.
# ---------------------------------------------------------------------------
def completion_net_kernel(xv_ref, scat_ref, add_ref, bmask_ref, rep_ref, hmask2_ref,
                          seg_ref, hexp_ref, vec_ref, win_ref, qkvw_ref, projw_ref,
                          fc1w_ref, fc2w_ref, outw_ref, out_ref):
    f32 = jnp.float32
    V = vec_ref[...]                                  # [NV_ROWS, VEC_W] packed 1-D params

    def row(i, width):                                # -> [1, width]
        return V[i:i + 1, 0:width]

    def layer_norm(v, w, b):
        # E[x^2] - mu^2 -> the two lane reductions are independent (no serial XLU chain)
        mu = jnp.mean(v, axis=-1, keepdims=True)
        ms = jnp.mean(v * v, axis=-1, keepdims=True)
        return (v - mu) * jax.lax.rsqrt(ms - mu * mu + LN_EPS) * w + b

    # ----- stem: in_norm + in_linear on all visible tokens (batch folded) ----
    h = layer_norm(xv_ref[...], row(0, ENC_DIM), row(1, ENC_DIM))               # [B*LV, ENC]
    h = jnp.dot(h, win_ref[...], preferred_element_type=f32) + row(2, EMB_DIM)  # [B*LV, EMB]

    # ----- MaskCompletion: precomputed scatter matmul + additive term --------
    x = jnp.dot(scat_ref[...], h, preferred_element_type=f32) + add_ref[...]    # [BL, EMB]

    bmask  = bmask_ref[...]    # [BL, HBL]   1 where query/key in same batch element
    rep    = rep_ref[...]      # [HBL, BL]   per-head row replication (0/1)
    hmask2 = hmask2_ref[...]   # [HBL, 2E]   keeps only head-h feature columns in segment h
    seg    = seg_ref[...]      # [HBL, H]    segment -> head indicator (denominator sum)
    hexp   = hexp_ref[...]     # [H, EMB]    head -> feature-column broadcast

    # ----- transformer blocks (Attention + Mlp; ls/drop_path = Identity) -----
    for l in range(DEPTH):
        base = NV_STEM + NV_BLK * l

        # -------- attention (all heads + all batches in one set of matmuls) --
        y = layer_norm(x, row(base + 0, EMB_DIM), row(base + 1, EMB_DIM))
        qkv = jnp.dot(y, qkvw_ref[l], preferred_element_type=f32) + row(base + 4, 3 * EMB_DIM)
        q = qkv[:, 0:EMB_DIM] * SCALE                                            # [BL, EMB]
        # replicate K,V per head (one matmul) and zero non-head feature columns
        kv_big = jnp.dot(rep, qkv[:, EMB_DIM:3 * EMB_DIM],
                         preferred_element_type=f32) * hmask2                    # [HBL, 2E]
        k_big = kv_big[:, 0:EMB_DIM]
        v_big = kv_big[:, EMB_DIM:2 * EMB_DIM]
        # scores for all heads at once; RHS consumed transposed (no explicit k.T)
        s = jax.lax.dot_general(q, k_big, (((1,), (1,)), ((), ())),
                                preferred_element_type=f32)                      # [BL, HBL]
        m = jnp.max(s, axis=-1, keepdims=True)                                   # one reduction
        e = jnp.exp(s - m) * bmask                                               # batch block-diag
        denom = jnp.dot(e, seg, preferred_element_type=f32)                      # [BL, H]
        r = jnp.dot(pl.reciprocal(denom, approx=True), hexp,
                    preferred_element_type=f32)                                  # [BL, EMB]
        o = jnp.dot(e, v_big, preferred_element_type=f32) * r                    # softmax@V, heads concat
        x = x + jnp.dot(o, projw_ref[l], preferred_element_type=f32) + row(base + 5, EMB_DIM)

        # -------- MLP ---------------------------------------------------------
        y = layer_norm(x, row(base + 2, EMB_DIM), row(base + 3, EMB_DIM))
        y = jnp.dot(y, fc1w_ref[l], preferred_element_type=f32) + row(base + 6, MLP_HID)
        y = 0.5 * y * (1.0 + jnp.tanh(GELU_C * (y + 0.044715 * y * y * y)))      # tanh GELU (EUP)
        y = jnp.dot(y, fc2w_ref[l], preferred_element_type=f32) + row(base + 7, EMB_DIM)
        x = x + y

    # ----- output head: out_norm + out_linear, drop the CLS-position token ---
    y = layer_norm(x, row(3, EMB_DIM), row(4, EMB_DIM))
    y = jnp.dot(y, outw_ref[...], preferred_element_type=f32) + row(5, ENC_DIM)  # [BL, ENC]
    for b in range(B):                                                           # static unroll
        out_ref[b] = y[b * L + 1:(b + 1) * L, :]


# ---------------------------------------------------------------------------
# Wrapper
# ---------------------------------------------------------------------------
def _static_attention_constants():
    eye_h = np.eye(N_HEADS, dtype=np.float32)
    rep   = np.tile(np.eye(BL, dtype=np.float32), (N_HEADS, 1))                  # [HBL, BL]
    hmask = np.repeat(np.repeat(eye_h, BL, axis=0), D_HEAD, axis=1)              # [HBL, EMB]
    hmask2 = np.concatenate([hmask, hmask], axis=1)                              # [HBL, 2E]
    seg   = np.repeat(eye_h, BL, axis=0)                                         # [HBL, H]
    hexp  = np.repeat(eye_h, D_HEAD, axis=1)                                     # [H, EMB]
    bb    = np.arange(BL) // L
    same  = (bb[:, None] == bb[None, :]).astype(np.float32)                      # [BL, BL]
    bmask = np.tile(same, (1, N_HEADS))                                          # [BL, HBL]
    return (jnp.asarray(bmask), jnp.asarray(rep), jnp.asarray(hmask2),
            jnp.asarray(seg), jnp.asarray(hexp))


def completion_net(x_vis, policy, p):
    f32 = jnp.float32
    pol = policy.astype(f32)                                                     # [B, L] in {0,1}

    # ---- MaskCompletion precompute (wrapper-side): scatter matrix + add term ----
    # NOTE: assumes exactly LV visible tokens per row (same assert as the module forward).
    rank = jnp.cumsum(pol, axis=1) - pol                                         # visible count before j
    scat = pol[:, :, None] * (jnp.abs(rank[:, :, None]
                                      - jnp.arange(LV, dtype=f32)[None, None, :]) < 0.5).astype(f32)
    eye_b = jnp.eye(B, dtype=f32)
    scat_full = jnp.einsum("bc,blv->blcv", eye_b, scat).reshape(BL, B * LV)      # block-diag over batch
    add_full = ((1.0 - pol)[:, :, None] * p["mask_token"][None, None, :]
                + p["pos_embed"][None, :, :]).reshape(BL, EMB_DIM)

    bmask, rep, hmask2, seg, hexp = _static_attention_constants()

    # ---- pack every 1-D parameter into one [NV_ROWS, VEC_W] slab (single DMA) ----
    def pad_row(v):
        v = jnp.asarray(v, f32).reshape(-1)
        return jnp.pad(v, (0, VEC_W - v.shape[0]))

    rows = [p["in_norm_w"], p["in_norm_b"], p["in_b"],
            p["out_norm_w"], p["out_norm_b"], p["out_b"]]
    for l in range(DEPTH):
        rows += [p["n1w"][l], p["n1b"][l], p["n3w"][l], p["n3b"][l],
                 p["qkv_b"][l], p["proj_b"][l], p["fc1_b"][l], p["fc2_b"][l]]
    vec_slab = jnp.stack([pad_row(r) for r in rows])                             # [22, 96]

    args = (x_vis.reshape(B * LV, ENC_DIM), scat_full, add_full,
            bmask, rep, hmask2, seg, hexp, vec_slab,
            p["in_w"], p["qkv_w"], p["proj_w"], p["fc1_w"], p["fc2_w"], p["out_w"])

    # ---- advisory cost estimate ------------------------------------------------
    blk_flops = (2 * BL * EMB_DIM * 3 * EMB_DIM            # qkv
                 + 2 * HBL * BL * 2 * EMB_DIM              # K/V replication
                 + 2 * BL * EMB_DIM * HBL                  # scores
                 + 2 * BL * HBL * N_HEADS                  # denominators
                 + 2 * BL * N_HEADS * EMB_DIM              # recip broadcast
                 + 2 * BL * HBL * EMB_DIM                  # P @ V
                 + 2 * BL * EMB_DIM * EMB_DIM              # proj
                 + 4 * BL * EMB_DIM * MLP_HID)             # MLP
    flops = (2 * B * LV * ENC_DIM * EMB_DIM + 2 * BL * B * LV * EMB_DIM
             + DEPTH * blk_flops + 2 * BL * EMB_DIM * ENC_DIM)
    bytes_accessed = 4 * (sum(int(np.prod(a.shape)) for a in args) + B * (L - 1) * ENC_DIM)
    cost = pl.CostEstimate(flops=int(flops),
                           transcendentals=int(DEPTH * (BL * HBL + BL * MLP_HID) + 6 * BL),
                           bytes_accessed=int(bytes_accessed))

    out = pl.pallas_call(
        completion_net_kernel,
        out_shape=jax.ShapeDtypeStruct((B, L - 1, ENC_DIM), jnp.float32),
        cost_estimate=cost,
    )(*args)
    return out


# ---------------------------------------------------------------------------
# Parameter construction (shapes follow the PyTorch module __init__)
# ---------------------------------------------------------------------------
def build_3d_sincos_pos_embed(grid_size, embed_dim, temperature=10000.0):
    h = w = d = grid_size
    gh, gw, gd = np.meshgrid(np.arange(h, dtype=np.float32),
                             np.arange(w, dtype=np.float32),
                             np.arange(d, dtype=np.float32), indexing="ij")
    pos_dim = embed_dim // 6
    omega = np.arange(pos_dim, dtype=np.float32) / pos_dim
    omega = 1.0 / (temperature ** omega)
    out_h = np.einsum("m,d->md", gh.reshape(-1), omega)
    out_w = np.einsum("m,d->md", gw.reshape(-1), omega)
    out_d = np.einsum("m,d->md", gd.reshape(-1), omega)
    pe = np.concatenate([np.sin(out_h), np.cos(out_h),
                         np.sin(out_w), np.cos(out_w),
                         np.sin(out_d), np.cos(out_d)], axis=1)
    pe = np.concatenate([np.zeros((1, embed_dim), np.float32), pe], axis=0)      # CLS slot (zeros)
    return jnp.asarray(pe, jnp.float32)                                          # [1 + h*w*d, embed_dim]


def init_params(key):
    ks = jax.random.split(key, 24)

    def lin(k, fi, fo, s=0.2):
        return jax.random.normal(k, (fi, fo), jnp.float32) * s

    def vec(k, n, s=0.1):
        return jax.random.normal(k, (n,), jnp.float32) * s

    p = {}
    p["in_norm_w"] = 1.0 + vec(ks[0], ENC_DIM)
    p["in_norm_b"] = vec(ks[1], ENC_DIM)
    p["in_w"] = lin(ks[2], ENC_DIM, EMB_DIM)
    p["in_b"] = vec(ks[3], EMB_DIM)
    # mask_token is zero-initialized in the module; random here to exercise the unshuffle path
    p["mask_token"] = vec(ks[4], EMB_DIM, 0.5)
    p["pos_embed"] = build_3d_sincos_pos_embed(GRID, EMB_DIM)
    p["n1w"] = 1.0 + 0.1 * jax.random.normal(ks[5], (DEPTH, EMB_DIM), jnp.float32)
    p["n1b"] = 0.1 * jax.random.normal(ks[6], (DEPTH, EMB_DIM), jnp.float32)
    p["n3w"] = 1.0 + 0.1 * jax.random.normal(ks[7], (DEPTH, EMB_DIM), jnp.float32)
    p["n3b"] = 0.1 * jax.random.normal(ks[8], (DEPTH, EMB_DIM), jnp.float32)
    # qkv output columns ordered (3, heads, head_dim) like the PyTorch reshape
    p["qkv_w"] = 0.2 * jax.random.normal(ks[9], (DEPTH, EMB_DIM, 3 * EMB_DIM), jnp.float32)
    p["qkv_b"] = 0.1 * jax.random.normal(ks[10], (DEPTH, 3 * EMB_DIM), jnp.float32)
    p["proj_w"] = 0.2 * jax.random.normal(ks[11], (DEPTH, EMB_DIM, EMB_DIM), jnp.float32)
    p["proj_b"] = 0.1 * jax.random.normal(ks[12], (DEPTH, EMB_DIM), jnp.float32)
    p["fc1_w"] = 0.2 * jax.random.normal(ks[13], (DEPTH, EMB_DIM, MLP_HID), jnp.float32)
    p["fc1_b"] = 0.1 * jax.random.normal(ks[14], (DEPTH, MLP_HID), jnp.float32)
    p["fc2_w"] = 0.2 * jax.random.normal(ks[15], (DEPTH, MLP_HID, EMB_DIM), jnp.float32)
    p["fc2_b"] = 0.1 * jax.random.normal(ks[16], (DEPTH, EMB_DIM), jnp.float32)
    p["out_norm_w"] = 1.0 + vec(ks[17], EMB_DIM)
    p["out_norm_b"] = vec(ks[18], EMB_DIM)
    p["out_w"] = lin(ks[19], EMB_DIM, ENC_DIM)
    p["out_b"] = vec(ks[20], ENC_DIM)
    return p


# ---------------------------------------------------------------------------
# Pure-JAX reference mirroring the PyTorch forward (argsort/gather unshuffle)
# ---------------------------------------------------------------------------
def reference(x_vis, policy, p):
    HI = jax.lax.Precision.HIGHEST

    def ln(v, w, b):
        mu = v.mean(-1, keepdims=True)
        var = ((v - mu) ** 2).mean(-1, keepdims=True)
        return (v - mu) / jnp.sqrt(var + LN_EPS) * w + b

    h = ln(x_vis, p["in_norm_w"], p["in_norm_b"])
    h = jnp.einsum("ble,ec->blc", h, p["in_w"], precision=HI) + p["in_b"]

    pol_np = np.asarray(policy)
    rows = []
    for b in range(B):
        vis = np.nonzero(pol_np[b] > 0.5)[0]
        nonvis = np.nonzero(pol_np[b] < 0.5)[0]
        concat_idx = np.concatenate([vis, nonvis])
        concat_x = jnp.concatenate(
            [h[b], jnp.tile(p["mask_token"][None, :], (LN_TOK, 1))], axis=0)
        rows.append(concat_x[np.argsort(concat_idx)])
    x = jnp.stack(rows) + p["pos_embed"][None]

    for l in range(DEPTH):
        y = ln(x, p["n1w"][l], p["n1b"][l])
        qkv = jnp.einsum("blc,cf->blf", y, p["qkv_w"][l], precision=HI) + p["qkv_b"][l]
        q = qkv[..., :EMB_DIM].reshape(B, L, N_HEADS, D_HEAD)
        k = qkv[..., EMB_DIM:2 * EMB_DIM].reshape(B, L, N_HEADS, D_HEAD)
        v = qkv[..., 2 * EMB_DIM:].reshape(B, L, N_HEADS, D_HEAD)
        att = jnp.einsum("bqhd,bkhd->bhqk", q, k, precision=HI) * SCALE
        att = jax.nn.softmax(att, axis=-1)
        o = jnp.einsum("bhqk,bkhd->bqhd", att, v, precision=HI).reshape(B, L, EMB_DIM)
        o = jnp.einsum("blc,cd->bld", o, p["proj_w"][l], precision=HI) + p["proj_b"][l]
        x = x + o
        y = ln(x, p["n3w"][l], p["n3b"][l])
        y = jnp.einsum("blc,ch->blh", y, p["fc1_w"][l], precision=HI) + p["fc1_b"][l]
        y = jax.nn.gelu(y, approximate=False)
        y = jnp.einsum("blh,hc->blc", y, p["fc2_w"][l], precision=HI) + p["fc2_b"][l]
        x = x + y

    x = ln(x, p["out_norm_w"], p["out_norm_b"])
    x = jnp.einsum("blc,ce->ble", x, p["out_w"], precision=HI) + p["out_b"]
    return x[:, 1:]


if __name__ == "__main__":
    key = jax.random.PRNGKey(0)
    kx, kp, kpol = jax.random.split(key, 3)

    x_vis = jax.random.normal(kx, (B, LV, ENC_DIM), jnp.float32)
    pol_np = np.zeros((B, L), np.float32)
    for b, kk in enumerate(jax.random.split(kpol, B)):
        idx = np.asarray(jax.random.permutation(kk, L))[:LV]
        pol_np[b, idx] = 1.0                                    # exactly LV visible per row
    policy = jnp.asarray(pol_np)
    params = init_params(kp)

    out = completion_net(x_vis, policy, params)
    out = jax.block_until_ready(out)

    ref_out = reference(x_vis, policy, params)
    # tolerance covers approx reciprocal (softmax denom) + tanh-GELU vs exact erf-GELU
    np.testing.assert_allclose(np.asarray(out), np.asarray(ref_out), rtol=1e-2, atol=1e-2)
    print("KERNEL_OK")
</pallas_src>

<mosaic_0001>
module attributes {stable_mosaic.version = 11 : i64} {
  func.func @completion_net_kernel(%arg0: memref<10x16xf32, #tpu.memory_space<vmem>>, %arg1: memref<18x10xf32, #tpu.memory_space<vmem>>, %arg2: memref<18x24xf32, #tpu.memory_space<vmem>>, %arg3: memref<18x72xf32, #tpu.memory_space<vmem>>, %arg4: memref<72x18xf32, #tpu.memory_space<vmem>>, %arg5: memref<72x48xf32, #tpu.memory_space<vmem>>, %arg6: memref<72x4xf32, #tpu.memory_space<vmem>>, %arg7: memref<4x24xf32, #tpu.memory_space<vmem>>, %arg8: memref<22x96xf32, #tpu.memory_space<vmem>>, %arg9: memref<16x24xf32, #tpu.memory_space<vmem>>, %arg10: memref<2x24x72xf32, #tpu.memory_space<vmem>>, %arg11: memref<2x24x24xf32, #tpu.memory_space<vmem>>, %arg12: memref<2x24x96xf32, #tpu.memory_space<vmem>>, %arg13: memref<2x96x24xf32, #tpu.memory_space<vmem>>, %arg14: memref<24x16xf32, #tpu.memory_space<vmem>>, %arg15: memref<2x8x16xf32, #tpu.memory_space<vmem>>) attributes {dimension_semantics = [], scalar_prefetch = 0 : i64, scratch_operands = 0 : i64, tpu.core_type = #tpu.core_type<tc>} {
    %c0 = arith.constant 0 : index
    %c0_0 = arith.constant 0 : index
    %0 = vector.load %arg8[%c0, %c0_0] : memref<22x96xf32, #tpu.memory_space<vmem>>, vector<22x96xf32>
    %c0_1 = arith.constant 0 : index
    %c0_2 = arith.constant 0 : index
    %1 = vector.load %arg0[%c0_1, %c0_2] : memref<10x16xf32, #tpu.memory_space<vmem>>, vector<10x16xf32>
    %2 = vector.extract_strided_slice %0 {offsets = [0, 0], sizes = [1, 16], strides = [1, 1]} : vector<22x96xf32> to vector<1x16xf32>
    %3 = vector.extract_strided_slice %0 {offsets = [1, 0], sizes = [1, 16], strides = [1, 1]} : vector<22x96xf32> to vector<1x16xf32>
    %cst = arith.constant dense<0.000000e+00> : vector<10xf32>
    %4 = vector.multi_reduction <add>, %1, %cst [1] : vector<10x16xf32> to vector<10xf32>
    %5 = vector.shape_cast %4 : vector<10xf32> to vector<10x1xf32>
    %cst_3 = arith.constant 1.600000e+01 : f32
    %6 = vector.broadcast %cst_3 : f32 to vector<10x1xf32>
    %7 = arith.divf %5, %6 : vector<10x1xf32>
    %8 = arith.mulf %1, %1 : vector<10x16xf32>
    %cst_4 = arith.constant dense<0.000000e+00> : vector<10xf32>
    %9 = vector.multi_reduction <add>, %8, %cst_4 [1] : vector<10x16xf32> to vector<10xf32>
    %10 = vector.shape_cast %9 : vector<10xf32> to vector<10x1xf32>
    %cst_5 = arith.constant 1.600000e+01 : f32
    %11 = vector.broadcast %cst_5 : f32 to vector<10x1xf32>
    %12 = arith.divf %10, %11 : vector<10x1xf32>
    %13 = vector.broadcast %7 : vector<10x1xf32> to vector<10x16xf32>
    %14 = arith.subf %1, %13 : vector<10x16xf32>
    %15 = arith.mulf %7, %7 : vector<10x1xf32>
    %16 = arith.subf %12, %15 : vector<10x1xf32>
    %cst_6 = arith.constant 9.99999997E-7 : f32
    %17 = vector.broadcast %cst_6 : f32 to vector<10x1xf32>
    %18 = arith.addf %16, %17 : vector<10x1xf32>
    %19 = math.rsqrt %18 : vector<10x1xf32>
    %20 = vector.broadcast %19 : vector<10x1xf32> to vector<10x16xf32>
    %21 = arith.mulf %14, %20 : vector<10x16xf32>
    %22 = vector.broadcast %2 : vector<1x16xf32> to vector<10x16xf32>
    %23 = arith.mulf %21, %22 : vector<10x16xf32>
    %24 = vector.broadcast %3 : vector<1x16xf32> to vector<10x16xf32>
    %25 = arith.addf %23, %24 : vector<10x16xf32>
    %c0_7 = arith.constant 0 : index
    %c0_8 = arith.constant 0 : index
    %26 = vector.load %arg9[%c0_7, %c0_8] : memref<16x24xf32, #tpu.memory_space<vmem>>, vector<16x24xf32>
    %cst_9 = arith.constant dense<0.000000e+00> : vector<10x24xf32>
    %27 = tpu.matmul %25, %26, %cst_9 {dimension_numbers = #tpu.dot_dimension_numbers<[1], [0], [0], [1], [0, 0, 1, 1], [], []>} : vector<10x16xf32>, vector<16x24xf32>, vector<10x24xf32> -> vector<10x24xf32>
    %28 = vector.extract_strided_slice %0 {offsets = [2, 0], sizes = [1, 24], strides = [1, 1]} : vector<22x96xf32> to vector<1x24xf32>
    %29 = vector.broadcast %28 : vector<1x24xf32> to vector<10x24xf32>
    %30 = arith.addf %27, %29 : vector<10x24xf32>
    %c0_10 = arith.constant 0 : index
    %c0_11 = arith.constant 0 : index
    %31 = vector.load %arg1[%c0_10, %c0_11] : memref<18x10xf32, #tpu.memory_space<vmem>>, vector<18x10xf32>
    %cst_12 = arith.constant dense<0.000000e+00> : vector<18x24xf32>
    %32 = tpu.matmul %31, %30, %cst_12 {dimension_numbers = #tpu.dot_dimension_numbers<[1], [0], [0], [1], [0, 0, 1, 1], [], []>} : vector<18x10xf32>, vector<10x24xf32>, vector<18x24xf32> -> vector<18x24xf32>
    %c0_13 = arith.constant 0 : index
    %c0_14 = arith.constant 0 : index
    %33 = vector.load %arg2[%c0_13, %c0_14] : memref<18x24xf32, #tpu.memory_space<vmem>>, vector<18x24xf32>
    %34 = arith.addf %32, %33 : vector<18x24xf32>
    %c0_15 = arith.constant 0 : index
    %c0_16 = arith.constant 0 : index
    %35 = vector.load %arg3[%c0_15, %c0_16] : memref<18x72xf32, #tpu.memory_space<vmem>>, vector<18x72xf32>
    %c0_17 = arith.constant 0 : index
    %c0_18 = arith.constant 0 : index
    %36 = vector.load %arg4[%c0_17, %c0_18] : memref<72x18xf32, #tpu.memory_space<vmem>>, vector<72x18xf32>
    %c0_19 = arith.constant 0 : index
    %c0_20 = arith.constant 0 : index
    %37 = vector.load %arg5[%c0_19, %c0_20] : memref<72x48xf32, #tpu.memory_space<vmem>>, vector<72x48xf32>
    %c0_21 = arith.constant 0 : index
    %c0_22 = arith.constant 0 : index
    %38 = vector.load %arg6[%c0_21, %c0_22] : memref<72x4xf32, #tpu.memory_space<vmem>>, vector<72x4xf32>
    %c0_23 = arith.constant 0 : index
    %c0_24 = arith.constant 0 : index
    %39 = vector.load %arg7[%c0_23, %c0_24] : memref<4x24xf32, #tpu.memory_space<vmem>>, vector<4x24xf32>
    %40 = vector.extract_strided_slice %0 {offsets = [6, 0], sizes = [1, 24], strides = [1, 1]} : vector<22x96xf32> to vector<1x24xf32>
    %41 = vector.extract_strided_slice %0 {offsets = [7, 0], sizes = [1, 24], strides = [1, 1]} : vector<22x96xf32> to vector<1x24xf32>
    %cst_25 = arith.constant dense<0.000000e+00> : vector<18xf32>
    %42 = vector.multi_reduction <add>, %34, %cst_25 [1] : vector<18x24xf32> to vector<18xf32>
    %43 = vector.shape_cast %42 : vector<18xf32> to vector<18x1xf32>
    %cst_26 = arith.constant 2.400000e+01 : f32
    %44 = vector.broadcast %cst_26 : f32 to vector<18x1xf32>
    %45 = arith.divf %43, %44 : vector<18x1xf32>
    %46 = arith.mulf %34, %34 : vector<18x24xf32>
    %cst_27 = arith.constant dense<0.000000e+00> : vector<18xf32>
    %47 = vector.multi_reduction <add>, %46, %cst_27 [1] : vector<18x24xf32> to vector<18xf32>
    %48 = vector.shape_cast %47 : vector<18xf32> to vector<18x1xf32>
    %cst_28 = arith.constant 2.400000e+01 : f32
    %49 = vector.broadcast %cst_28 : f32 to vector<18x1xf32>
    %50 = arith.divf %48, %49 : vector<18x1xf32>
    %51 = vector.broadcast %45 : vector<18x1xf32> to vector<18x24xf32>
    %52 = arith.subf %34, %51 : vector<18x24xf32>
    %53 = arith.mulf %45, %45 : vector<18x1xf32>
    %54 = arith.subf %50, %53 : vector<18x1xf32>
    %cst_29 = arith.constant 9.99999997E-7 : f32
    %55 = vector.broadcast %cst_29 : f32 to vector<18x1xf32>
    %56 = arith.addf %54, %55 : vector<18x1xf32>
    %57 = math.rsqrt %56 : vector<18x1xf32>
    %58 = vector.broadcast %57 : vector<18x1xf32> to vector<18x24xf32>
    %59 = arith.mulf %52, %58 : vector<18x24xf32>
    %60 = vector.broadcast %40 : vector<1x24xf32> to vector<18x24xf32>
    %61 = arith.mulf %59, %60 : vector<18x24xf32>
    %62 = vector.broadcast %41 : vector<1x24xf32> to vector<18x24xf32>
    %63 = arith.addf %61, %62 : vector<18x24xf32>
    %c0_30 = arith.constant 0 : index
    %c0_31 = arith.constant 0 : index
    %c0_32 = arith.constant 0 : index
    %64 = vector.load %arg10[%c0_30, %c0_31, %c0_32] : memref<2x24x72xf32, #tpu.memory_space<vmem>>, vector<1x24x72xf32>
    %65 = vector.shape_cast %64 : vector<1x24x72xf32> to vector<24x72xf32>
    %cst_33 = arith.constant dense<0.000000e+00> : vector<18x72xf32>
    %66 = tpu.matmul %63, %65, %cst_33 {dimension_numbers = #tpu.dot_dimension_numbers<[1], [0], [0], [1], [0, 0, 1, 1], [], []>} : vector<18x24xf32>, vector<24x72xf32>, vector<18x72xf32> -> vector<18x72xf32>
    %67 = vector.extract_strided_slice %0 {offsets = [10, 0], sizes = [1, 72], strides = [1, 1]} : vector<22x96xf32> to vector<1x72xf32>
    %68 = vector.broadcast %67 : vector<1x72xf32> to vector<18x72xf32>
    %69 = arith.addf %66, %68 : vector<18x72xf32>
    %70 = vector.extract_strided_slice %69 {offsets = [0, 0], sizes = [18, 24], strides = [1, 1]} : vector<18x72xf32> to vector<18x24xf32>
    %cst_34 = arith.constant 0.408248305 : f32
    %71 = vector.broadcast %cst_34 : f32 to vector<18x24xf32>
    %72 = arith.mulf %70, %71 : vector<18x24xf32>
    %73 = vector.extract_strided_slice %69 {offsets = [0, 24], sizes = [18, 48], strides = [1, 1]} : vector<18x72xf32> to vector<18x48xf32>
    %cst_35 = arith.constant dense<0.000000e+00> : vector<72x48xf32>
    %74 = tpu.matmul %36, %73, %cst_35 {dimension_numbers = #tpu.dot_dimension_numbers<[1], [0], [0], [1], [0, 0, 1, 1], [], []>} : vector<72x18xf32>, vector<18x48xf32>, vector<72x48xf32> -> vector<72x48xf32>
    %75 = arith.mulf %74, %37 : vector<72x48xf32>
    %76 = vector.extract_strided_slice %75 {offsets = [0, 0], sizes = [72, 24], strides = [1, 1]} : vector<72x48xf32> to vector<72x24xf32>
    %77 = vector.extract_strided_slice %75 {offsets = [0, 24], sizes = [72, 24], strides = [1, 1]} : vector<72x48xf32> to vector<72x24xf32>
    %cst_36 = arith.constant dense<0.000000e+00> : vector<18x72xf32>
    %78 = tpu.matmul %72, %76, %cst_36 {dimension_numbers = #tpu.dot_dimension_numbers<[1], [1], [0], [0], [0, 0, 1, 0], [], []>} : vector<18x24xf32>, vector<72x24xf32>, vector<18x72xf32> -> vector<18x72xf32>
    %cst_37 = arith.constant dense<0xFF800000> : vector<18xf32>
    %79 = vector.multi_reduction <maximumf>, %78, %cst_37 [1] : vector<18x72xf32> to vector<18xf32>
    %80 = vector.shape_cast %79 : vector<18xf32> to vector<18x1xf32>
    %81 = vector.broadcast %80 : vector<18x1xf32> to vector<18x72xf32>
    %82 = arith.subf %78, %81 : vector<18x72xf32>
    %83 = math.exp %82 : vector<18x72xf32>
    %84 = arith.mulf %83, %35 : vector<18x72xf32>
    %cst_38 = arith.constant dense<0.000000e+00> : vector<18x4xf32>
    %85 = tpu.matmul %84, %38, %cst_38 {dimension_numbers = #tpu.dot_dimension_numbers<[1], [0], [0], [1], [0, 0, 1, 1], [], []>} : vector<18x72xf32>, vector<72x4xf32>, vector<18x4xf32> -> vector<18x4xf32>
    %86 = tpu.reciprocal %85 {approx = true} : vector<18x4xf32> -> vector<18x4xf32>
    %cst_39 = arith.constant dense<0.000000e+00> : vector<18x24xf32>
    %87 = tpu.matmul %86, %39, %cst_39 {dimension_numbers = #tpu.dot_dimension_numbers<[1], [0], [0], [1], [0, 0, 1, 1], [], []>} : vector<18x4xf32>, vector<4x24xf32>, vector<18x24xf32> -> vector<18x24xf32>
    %cst_40 = arith.constant dense<0.000000e+00> : vector<18x24xf32>
    %88 = tpu.matmul %84, %77, %cst_40 {dimension_numbers = #tpu.dot_dimension_numbers<[1], [0], [0], [1], [0, 0, 1, 1], [], []>} : vector<18x72xf32>, vector<72x24xf32>, vector<18x24xf32> -> vector<18x24xf32>
    %89 = arith.mulf %88, %87 : vector<18x24xf32>
    %c0_41 = arith.constant 0 : index
    %c0_42 = arith.constant 0 : index
    %c0_43 = arith.constant 0 : index
    %90 = vector.load %arg11[%c0_41, %c0_42, %c0_43] : memref<2x24x24xf32, #tpu.memory_space<vmem>>, vector<1x24x24xf32>
    %91 = vector.shape_cast %90 : vector<1x24x24xf32> to vector<24x24xf32>
    %cst_44 = arith.constant dense<0.000000e+00> : vector<18x24xf32>
    %92 = tpu.matmul %89, %91, %cst_44 {dimension_numbers = #tpu.dot_dimension_numbers<[1], [0], [0], [1], [0, 0, 1, 1], [], []>} : vector<18x24xf32>, vector<24x24xf32>, vector<18x24xf32> -> vector<18x24xf32>
    %93 = arith.addf %34, %92 : vector<18x24xf32>
    %94 = vector.extract_strided_slice %0 {offsets = [11, 0], sizes = [1, 24], strides = [1, 1]} : vector<22x96xf32> to vector<1x24xf32>
    %95 = vector.broadcast %94 : vector<1x24xf32> to vector<18x24xf32>
    %96 = arith.addf %93, %95 : vector<18x24xf32>
    %97 = vector.extract_strided_slice %0 {offsets = [8, 0], sizes = [1, 24], strides = [1, 1]} : vector<22x96xf32> to vector<1x24xf32>
    %98 = vector.extract_strided_slice %0 {offsets = [9, 0], sizes = [1, 24], strides = [1, 1]} : vector<22x96xf32> to vector<1x24xf32>
    %cst_45 = arith.constant dense<0.000000e+00> : vector<18xf32>
    %99 = vector.multi_reduction <add>, %96, %cst_45 [1] : vector<18x24xf32> to vector<18xf32>
    %100 = vector.shape_cast %99 : vector<18xf32> to vector<18x1xf32>
    %cst_46 = arith.constant 2.400000e+01 : f32
    %101 = vector.broadcast %cst_46 : f32 to vector<18x1xf32>
    %102 = arith.divf %100, %101 : vector<18x1xf32>
    %103 = arith.mulf %96, %96 : vector<18x24xf32>
    %cst_47 = arith.constant dense<0.000000e+00> : vector<18xf32>
    %104 = vector.multi_reduction <add>, %103, %cst_47 [1] : vector<18x24xf32> to vector<18xf32>
    %105 = vector.shape_cast %104 : vector<18xf32> to vector<18x1xf32>
    %cst_48 = arith.constant 2.400000e+01 : f32
    %106 = vector.broadcast %cst_48 : f32 to vector<18x1xf32>
    %107 = arith.divf %105, %106 : vector<18x1xf32>
    %108 = vector.broadcast %102 : vector<18x1xf32> to vector<18x24xf32>
    %109 = arith.subf %96, %108 : vector<18x24xf32>
    %110 = arith.mulf %102, %102 : vector<18x1xf32>
    %111 = arith.subf %107, %110 : vector<18x1xf32>
    %cst_49 = arith.constant 9.99999997E-7 : f32
    %112 = vector.broadcast %cst_49 : f32 to vector<18x1xf32>
    %113 = arith.addf %111, %112 : vector<18x1xf32>
    %114 = math.rsqrt %113 : vector<18x1xf32>
    %115 = vector.broadcast %114 : vector<18x1xf32> to vector<18x24xf32>
    %116 = arith.mulf %109, %115 : vector<18x24xf32>
    %117 = vector.broadcast %97 : vector<1x24xf32> to vector<18x24xf32>
    %118 = arith.mulf %116, %117 : vector<18x24xf32>
    %119 = vector.broadcast %98 : vector<1x24xf32> to vector<18x24xf32>
    %120 = arith.addf %118, %119 : vector<18x24xf32>
    %c0_50 = arith.constant 0 : index
    %c0_51 = arith.constant 0 : index
    %c0_52 = arith.constant 0 : index
    %121 = vector.load %arg12[%c0_50, %c0_51, %c0_52] : memref<2x24x96xf32, #tpu.memory_space<vmem>>, vector<1x24x96xf32>
    %122 = vector.shape_cast %121 : vector<1x24x96xf32> to vector<24x96xf32>
    %cst_53 = arith.constant dense<0.000000e+00> : vector<18x96xf32>
    %123 = tpu.matmul %120, %122, %cst_53 {dimension_numbers = #tpu.dot_dimension_numbers<[1], [0], [0], [1], [0, 0, 1, 1], [], []>} : vector<18x24xf32>, vector<24x96xf32>, vector<18x96xf32> -> vector<18x96xf32>
    %124 = vector.extract_strided_slice %0 {offsets = [12, 0], sizes = [1, 96], strides = [1, 1]} : vector<22x96xf32> to vector<1x96xf32>
    %125 = vector.broadcast %124 : vector<1x96xf32> to vector<18x96xf32>
    %126 = arith.addf %123, %125 : vector<18x96xf32>
    %cst_54 = arith.constant 5.000000e-01 : f32
    %127 = vector.broadcast %cst_54 : f32 to vector<18x96xf32>
    %128 = arith.mulf %127, %126 : vector<18x96xf32>
    %cst_55 = arith.constant 4.471500e-02 : f32
    %129 = vector.broadcast %cst_55 : f32 to vector<18x96xf32>
    %130 = arith.mulf %129, %126 : vector<18x96xf32>
    %131 = arith.mulf %130, %126 : vector<18x96xf32>
    %132 = arith.mulf %131, %126 : vector<18x96xf32>
    %133 = arith.addf %126, %132 : vector<18x96xf32>
    %cst_56 = arith.constant 0.797884583 : f32
    %134 = vector.broadcast %cst_56 : f32 to vector<18x96xf32>
    %135 = arith.mulf %134, %133 : vector<18x96xf32>
    %136 = math.tanh %135 : vector<18x96xf32>
    %cst_57 = arith.constant 1.000000e+00 : f32
    %137 = vector.broadcast %cst_57 : f32 to vector<18x96xf32>
    %138 = arith.addf %137, %136 : vector<18x96xf32>
    %139 = arith.mulf %128, %138 : vector<18x96xf32>
    %c0_58 = arith.constant 0 : index
    %c0_59 = arith.constant 0 : index
    %c0_60 = arith.constant 0 : index
    %140 = vector.load %arg13[%c0_58, %c0_59, %c0_60] : memref<2x96x24xf32, #tpu.memory_space<vmem>>, vector<1x96x24xf32>
    %141 = vector.shape_cast %140 : vector<1x96x24xf32> to vector<96x24xf32>
    %cst_61 = arith.constant dense<0.000000e+00> : vector<18x24xf32>
    %142 = tpu.matmul %139, %141, %cst_61 {dimension_numbers = #tpu.dot_dimension_numbers<[1], [0], [0], [1], [0, 0, 1, 1], [], []>} : vector<18x96xf32>, vector<96x24xf32>, vector<18x24xf32> -> vector<18x24xf32>
    %143 = vector.extract_strided_slice %0 {offsets = [13, 0], sizes = [1, 24], strides = [1, 1]} : vector<22x96xf32> to vector<1x24xf32>
    %144 = vector.broadcast %143 : vector<1x24xf32> to vector<18x24xf32>
    %145 = arith.addf %142, %144 : vector<18x24xf32>
    %146 = arith.addf %96, %145 : vector<18x24xf32>
    %147 = vector.extract_strided_slice %0 {offsets = [14, 0], sizes = [1, 24], strides = [1, 1]} : vector<22x96xf32> to vector<1x24xf32>
    %148 = vector.extract_strided_slice %0 {offsets = [15, 0], sizes = [1, 24], strides = [1, 1]} : vector<22x96xf32> to vector<1x24xf32>
    %cst_62 = arith.constant dense<0.000000e+00> : vector<18xf32>
    %149 = vector.multi_reduction <add>, %146, %cst_62 [1] : vector<18x24xf32> to vector<18xf32>
    %150 = vector.shape_cast %149 : vector<18xf32> to vector<18x1xf32>
    %cst_63 = arith.constant 2.400000e+01 : f32
    %151 = vector.broadcast %cst_63 : f32 to vector<18x1xf32>
    %152 = arith.divf %150, %151 : vector<18x1xf32>
    %153 = arith.mulf %146, %146 : vector<18x24xf32>
    %cst_64 = arith.constant dense<0.000000e+00> : vector<18xf32>
    %154 = vector.multi_reduction <add>, %153, %cst_64 [1] : vector<18x24xf32> to vector<18xf32>
    %155 = vector.shape_cast %154 : vector<18xf32> to vector<18x1xf32>
    %cst_65 = arith.constant 2.400000e+01 : f32
    %156 = vector.broadcast %cst_65 : f32 to vector<18x1xf32>
    %157 = arith.divf %155, %156 : vector<18x1xf32>
    %158 = vector.broadcast %152 : vector<18x1xf32> to vector<18x24xf32>
    %159 = arith.subf %146, %158 : vector<18x24xf32>
    %160 = arith.mulf %152, %152 : vector<18x1xf32>
    %161 = arith.subf %157, %160 : vector<18x1xf32>
    %cst_66 = arith.constant 9.99999997E-7 : f32
    %162 = vector.broadcast %cst_66 : f32 to vector<18x1xf32>
    %163 = arith.addf %161, %162 : vector<18x1xf32>
    %164 = math.rsqrt %163 : vector<18x1xf32>
    %165 = vector.broadcast %164 : vector<18x1xf32> to vector<18x24xf32>
    %166 = arith.mulf %159, %165 : vector<18x24xf32>
    %167 = vector.broadcast %147 : vector<1x24xf32> to vector<18x24xf32>
    %168 = arith.mulf %166, %167 : vector<18x24xf32>
    %169 = vector.broadcast %148 : vector<1x24xf32> to vector<18x24xf32>
    %170 = arith.addf %168, %169 : vector<18x24xf32>
    %c1 = arith.constant 1 : index
    %c0_67 = arith.constant 0 : index
    %c0_68 = arith.constant 0 : index
    %171 = vector.load %arg10[%c1, %c0_67, %c0_68] : memref<2x24x72xf32, #tpu.memory_space<vmem>>, vector<1x24x72xf32>
    %172 = vector.shape_cast %171 : vector<1x24x72xf32> to vector<24x72xf32>
    %cst_69 = arith.constant dense<0.000000e+00> : vector<18x72xf32>
    %173 = tpu.matmul %170, %172, %cst_69 {dimension_numbers = #tpu.dot_dimension_numbers<[1], [0], [0], [1], [0, 0, 1, 1], [], []>} : vector<18x24xf32>, vector<24x72xf32>, vector<18x72xf32> -> vector<18x72xf32>
    %174 = vector.extract_strided_slice %0 {offsets = [18, 0], sizes = [1, 72], strides = [1, 1]} : vector<22x96xf32> to vector<1x72xf32>
    %175 = vector.broadcast %174 : vector<1x72xf32> to vector<18x72xf32>
    %176 = arith.addf %173, %175 : vector<18x72xf32>
    %177 = vector.extract_strided_slice %176 {offsets = [0, 0], sizes = [18, 24], strides = [1, 1]} : vector<18x72xf32> to vector<18x24xf32>
    %cst_70 = arith.constant 0.408248305 : f32
    %178 = vector.broadcast %cst_70 : f32 to vector<18x24xf32>
    %179 = arith.mulf %177, %178 : vector<18x24xf32>
    %180 = vector.extract_strided_slice %176 {offsets = [0, 24], sizes = [18, 48], strides = [1, 1]} : vector<18x72xf32> to vector<18x48xf32>
    %cst_71 = arith.constant dense<0.000000e+00> : vector<72x48xf32>
    %181 = tpu.matmul %36, %180, %cst_71 {dimension_numbers = #tpu.dot_dimension_numbers<[1], [0], [0], [1], [0, 0, 1, 1], [], []>} : vector<72x18xf32>, vector<18x48xf32>, vector<72x48xf32> -> vector<72x48xf32>
    %182 = arith.mulf %181, %37 : vector<72x48xf32>
    %183 = vector.extract_strided_slice %182 {offsets = [0, 0], sizes = [72, 24], strides = [1, 1]} : vector<72x48xf32> to vector<72x24xf32>
    %184 = vector.extract_strided_slice %182 {offsets = [0, 24], sizes = [72, 24], strides = [1, 1]} : vector<72x48xf32> to vector<72x24xf32>
    %cst_72 = arith.constant dense<0.000000e+00> : vector<18x72xf32>
    %185 = tpu.matmul %179, %183, %cst_72 {dimension_numbers = #tpu.dot_dimension_numbers<[1], [1], [0], [0], [0, 0, 1, 0], [], []>} : vector<18x24xf32>, vector<72x24xf32>, vector<18x72xf32> -> vector<18x72xf32>
    %cst_73 = arith.constant dense<0xFF800000> : vector<18xf32>
    %186 = vector.multi_reduction <maximumf>, %185, %cst_73 [1] : vector<18x72xf32> to vector<18xf32>
    %187 = vector.shape_cast %186 : vector<18xf32> to vector<18x1xf32>
    %188 = vector.broadcast %187 : vector<18x1xf32> to vector<18x72xf32>
    %189 = arith.subf %185, %188 : vector<18x72xf32>
    %190 = math.exp %189 : vector<18x72xf32>
    %191 = arith.mulf %190, %35 : vector<18x72xf32>
    %cst_74 = arith.constant dense<0.000000e+00> : vector<18x4xf32>
    %192 = tpu.matmul %191, %38, %cst_74 {dimension_numbers = #tpu.dot_dimension_numbers<[1], [0], [0], [1], [0, 0, 1, 1], [], []>} : vector<18x72xf32>, vector<72x4xf32>, vector<18x4xf32> -> vector<18x4xf32>
    %193 = tpu.reciprocal %192 {approx = true} : vector<18x4xf32> -> vector<18x4xf32>
    %cst_75 = arith.constant dense<0.000000e+00> : vector<18x24xf32>
    %194 = tpu.matmul %193, %39, %cst_75 {dimension_numbers = #tpu.dot_dimension_numbers<[1], [0], [0], [1], [0, 0, 1, 1], [], []>} : vector<18x4xf32>, vector<4x24xf32>, vector<18x24xf32> -> vector<18x24xf32>
    %cst_76 = arith.constant dense<0.000000e+00> : vector<18x24xf32>
    %195 = tpu.matmul %191, %184, %cst_76 {dimension_numbers = #tpu.dot_dimension_numbers<[1], [0], [0], [1], [0, 0, 1, 1], [], []>} : vector<18x72xf32>, vector<72x24xf32>, vector<18x24xf32> -> vector<18x24xf32>
    %196 = arith.mulf %195, %194 : vector<18x24xf32>
    %c1_77 = arith.constant 1 : index
    %c0_78 = arith.constant 0 : index
    %c0_79 = arith.constant 0 : index
    %197 = vector.load %arg11[%c1_77, %c0_78, %c0_79] : memref<2x24x24xf32, #tpu.memory_space<vmem>>, vector<1x24x24xf32>
    %198 = vector.shape_cast %197 : vector<1x24x24xf32> to vector<24x24xf32>
    %cst_80 = arith.constant dense<0.000000e+00> : vector<18x24xf32>
    %199 = tpu.matmul %196, %198, %cst_80 {dimension_numbers = #tpu.dot_dimension_numbers<[1], [0], [0], [1], [0, 0, 1, 1], [], []>} : vector<18x24xf32>, vector<24x24xf32>, vector<18x24xf32> -> vector<18x24xf32>
    %200 = arith.addf %146, %199 : vector<18x24xf32>
    %201 = vector.extract_strided_slice %0 {offsets = [19, 0], sizes = [1, 24], strides = [1, 1]} : vector<22x96xf32> to vector<1x24xf32>
    %202 = vector.broadcast %201 : vector<1x24xf32> to vector<18x24xf32>
    %203 = arith.addf %200, %202 : vector<18x24xf32>
    %204 = vector.extract_strided_slice %0 {offsets = [16, 0], sizes = [1, 24], strides = [1, 1]} : vector<22x96xf32> to vector<1x24xf32>
    %205 = vector.extract_strided_slice %0 {offsets = [17, 0], sizes = [1, 24], strides = [1, 1]} : vector<22x96xf32> to vector<1x24xf32>
    %cst_81 = arith.constant dense<0.000000e+00> : vector<18xf32>
    %206 = vector.multi_reduction <add>, %203, %cst_81 [1] : vector<18x24xf32> to vector<18xf32>
    %207 = vector.shape_cast %206 : vector<18xf32> to vector<18x1xf32>
    %cst_82 = arith.constant 2.400000e+01 : f32
    %208 = vector.broadcast %cst_82 : f32 to vector<18x1xf32>
    %209 = arith.divf %207, %208 : vector<18x1xf32>
    %210 = arith.mulf %203, %203 : vector<18x24xf32>
    %cst_83 = arith.constant dense<0.000000e+00> : vector<18xf32>
    %211 = vector.multi_reduction <add>, %210, %cst_83 [1] : vector<18x24xf32> to vector<18xf32>
    %212 = vector.shape_cast %211 : vector<18xf32> to vector<18x1xf32>
    %cst_84 = arith.constant 2.400000e+01 : f32
    %213 = vector.broadcast %cst_84 : f32 to vector<18x1xf32>
    %214 = arith.divf %212, %213 : vector<18x1xf32>
    %215 = vector.broadcast %209 : vector<18x1xf32> to vector<18x24xf32>
    %216 = arith.subf %203, %215 : vector<18x24xf32>
    %217 = arith.mulf %209, %209 : vector<18x1xf32>
    %218 = arith.subf %214, %217 : vector<18x1xf32>
    %cst_85 = arith.constant 9.99999997E-7 : f32
    %219 = vector.broadcast %cst_85 : f32 to vector<18x1xf32>
    %220 = arith.addf %218, %219 : vector<18x1xf32>
    %221 = math.rsqrt %220 : vector<18x1xf32>
    %222 = vector.broadcast %221 : vector<18x1xf32> to vector<18x24xf32>
    %223 = arith.mulf %216, %222 : vector<18x24xf32>
    %224 = vector.broadcast %204 : vector<1x24xf32> to vector<18x24xf32>
    %225 = arith.mulf %223, %224 : vector<18x24xf32>
    %226 = vector.broadcast %205 : vector<1x24xf32> to vector<18x24xf32>
    %227 = arith.addf %225, %226 : vector<18x24xf32>
    %c1_86 = arith.constant 1 : index
    %c0_87 = arith.constant 0 : index
    %c0_88 = arith.constant 0 : index
    %228 = vector.load %arg12[%c1_86, %c0_87, %c0_88] : memref<2x24x96xf32, #tpu.memory_space<vmem>>, vector<1x24x96xf32>
    %229 = vector.shape_cast %228 : vector<1x24x96xf32> to vector<24x96xf32>
    %cst_89 = arith.constant dense<0.000000e+00> : vector<18x96xf32>
    %230 = tpu.matmul %227, %229, %cst_89 {dimension_numbers = #tpu.dot_dimension_numbers<[1], [0], [0], [1], [0, 0, 1, 1], [], []>} : vector<18x24xf32>, vector<24x96xf32>, vector<18x96xf32> -> vector<18x96xf32>
    %231 = vector.extract_strided_slice %0 {offsets = [20, 0], sizes = [1, 96], strides = [1, 1]} : vector<22x96xf32> to vector<1x96xf32>
    %232 = vector.broadcast %231 : vector<1x96xf32> to vector<18x96xf32>
    %233 = arith.addf %230, %232 : vector<18x96xf32>
    %cst_90 = arith.constant 5.000000e-01 : f32
    %234 = vector.broadcast %cst_90 : f32 to vector<18x96xf32>
    %235 = arith.mulf %234, %233 : vector<18x96xf32>
    %cst_91 = arith.constant 4.471500e-02 : f32
    %236 = vector.broadcast %cst_91 : f32 to vector<18x96xf32>
    %237 = arith.mulf %236, %233 : vector<18x96xf32>
    %238 = arith.mulf %237, %233 : vector<18x96xf32>
    %239 = arith.mulf %238, %233 : vector<18x96xf32>
    %240 = arith.addf %233, %239 : vector<18x96xf32>
    %cst_92 = arith.constant 0.797884583 : f32
    %241 = vector.broadcast %cst_92 : f32 to vector<18x96xf32>
    %242 = arith.mulf %241, %240 : vector<18x96xf32>
    %243 = math.tanh %242 : vector<18x96xf32>
    %cst_93 = arith.constant 1.000000e+00 : f32
    %244 = vector.broadcast %cst_93 : f32 to vector<18x96xf32>
    %245 = arith.addf %244, %243 : vector<18x96xf32>
    %246 = arith.mulf %235, %245 : vector<18x96xf32>
    %c1_94 = arith.constant 1 : index
    %c0_95 = arith.constant 0 : index
    %c0_96 = arith.constant 0 : index
    %247 = vector.load %arg13[%c1_94, %c0_95, %c0_96] : memref<2x96x24xf32, #tpu.memory_space<vmem>>, vector<1x96x24xf32>
    %248 = vector.shape_cast %247 : vector<1x96x24xf32> to vector<96x24xf32>
    %cst_97 = arith.constant dense<0.000000e+00> : vector<18x24xf32>
    %249 = tpu.matmul %246, %248, %cst_97 {dimension_numbers = #tpu.dot_dimension_numbers<[1], [0], [0], [1], [0, 0, 1, 1], [], []>} : vector<18x96xf32>, vector<96x24xf32>, vector<18x24xf32> -> vector<18x24xf32>
    %250 = vector.extract_strided_slice %0 {offsets = [21, 0], sizes = [1, 24], strides = [1, 1]} : vector<22x96xf32> to vector<1x24xf32>
    %251 = vector.broadcast %250 : vector<1x24xf32> to vector<18x24xf32>
    %252 = arith.addf %249, %251 : vector<18x24xf32>
    %253 = arith.addf %203, %252 : vector<18x24xf32>
    %254 = vector.extract_strided_slice %0 {offsets = [3, 0], sizes = [1, 24], strides = [1, 1]} : vector<22x96xf32> to vector<1x24xf32>
    %255 = vector.extract_strided_slice %0 {offsets = [4, 0], sizes = [1, 24], strides = [1, 1]} : vector<22x96xf32> to vector<1x24xf32>
    %cst_98 = arith.constant dense<0.000000e+00> : vector<18xf32>
    %256 = vector.multi_reduction <add>, %253, %cst_98 [1] : vector<18x24xf32> to vector<18xf32>
    %257 = vector.shape_cast %256 : vector<18xf32> to vector<18x1xf32>
    %cst_99 = arith.constant 2.400000e+01 : f32
    %258 = vector.broadcast %cst_99 : f32 to vector<18x1xf32>
    %259 = arith.divf %257, %258 : vector<18x1xf32>
    %260 = arith.mulf %253, %253 : vector<18x24xf32>
    %cst_100 = arith.constant dense<0.000000e+00> : vector<18xf32>
    %261 = vector.multi_reduction <add>, %260, %cst_100 [1] : vector<18x24xf32> to vector<18xf32>
    %262 = vector.shape_cast %261 : vector<18xf32> to vector<18x1xf32>
    %cst_101 = arith.constant 2.400000e+01 : f32
    %263 = vector.broadcast %cst_101 : f32 to vector<18x1xf32>
    %264 = arith.divf %262, %263 : vector<18x1xf32>
    %265 = vector.broadcast %259 : vector<18x1xf32> to vector<18x24xf32>
    %266 = arith.subf %253, %265 : vector<18x24xf32>
    %267 = arith.mulf %259, %259 : vector<18x1xf32>
    %268 = arith.subf %264, %267 : vector<18x1xf32>
    %cst_102 = arith.constant 9.99999997E-7 : f32
    %269 = vector.broadcast %cst_102 : f32 to vector<18x1xf32>
    %270 = arith.addf %268, %269 : vector<18x1xf32>
    %271 = math.rsqrt %270 : vector<18x1xf32>
    %272 = vector.broadcast %271 : vector<18x1xf32> to vector<18x24xf32>
    %273 = arith.mulf %266, %272 : vector<18x24xf32>
    %274 = vector.broadcast %254 : vector<1x24xf32> to vector<18x24xf32>
    %275 = arith.mulf %273, %274 : vector<18x24xf32>
    %276 = vector.broadcast %255 : vector<1x24xf32> to vector<18x24xf32>
    %277 = arith.addf %275, %276 : vector<18x24xf32>
    %c0_103 = arith.constant 0 : index
    %c0_104 = arith.constant 0 : index
    %278 = vector.load %arg14[%c0_103, %c0_104] : memref<24x16xf32, #tpu.memory_space<vmem>>, vector<24x16xf32>
    %cst_105 = arith.constant dense<0.000000e+00> : vector<18x16xf32>
    %279 = tpu.matmul %277, %278, %cst_105 {dimension_numbers = #tpu.dot_dimension_numbers<[1], [0], [0], [1], [0, 0, 1, 1], [], []>} : vector<18x24xf32>, vector<24x16xf32>, vector<18x16xf32> -> vector<18x16xf32>
    %280 = vector.extract_strided_slice %0 {offsets = [5, 0], sizes = [1, 16], strides = [1, 1]} : vector<22x96xf32> to vector<1x16xf32>
    %281 = vector.broadcast %280 : vector<1x16xf32> to vector<18x16xf32>
    %282 = arith.addf %279, %281 : vector<18x16xf32>
    %283 = vector.extract_strided_slice %282 {offsets = [1, 0], sizes = [8, 16], strides = [1, 1]} : vector<18x16xf32> to vector<8x16xf32>
    %c0_106 = arith.constant 0 : index
    %c0_107 = arith.constant 0 : index
    %c0_108 = arith.constant 0 : index
    %284 = vector.load %arg15[%c0_106, %c0_107, %c0_108] : memref<2x8x16xf32, #tpu.memory_space<vmem>>, vector<1x8x16xf32>
    %285 = vector.shape_cast %284 : vector<1x8x16xf32> to vector<8x16xf32>
    %286 = vector.shape_cast %283 : vector<8x16xf32> to vector<1x8x16xf32>
    tpu.vector_store %arg15[%c0_106, %c0_107, %c0_108], %286 {strides = array<i32>} : memref<2x8x16xf32, #tpu.memory_space<vmem>>, vector<1x8x16xf32>,
    %287 = vector.extract_strided_slice %282 {offsets = [10, 0], sizes = [8, 16], strides = [1, 1]} : vector<18x16xf32> to vector<8x16xf32>
    %c1_109 = arith.constant 1 : index
    %c0_110 = arith.constant 0 : index
    %c0_111 = arith.constant 0 : index
    %288 = vector.load %arg15[%c1_109, %c0_110, %c0_111] : memref<2x8x16xf32, #tpu.memory_space<vmem>>, vector<1x8x16xf32>
    %289 = vector.shape_cast %288 : vector<1x8x16xf32> to vector<8x16xf32>
    %290 = vector.shape_cast %287 : vector<8x16xf32> to vector<1x8x16xf32>
    tpu.vector_store %arg15[%c1_109, %c0_110, %c0_111], %290 {strides = array<i32>} : memref<2x8x16xf32, #tpu.memory_space<vmem>>, vector<1x8x16xf32>,
    return
  }
}

</mosaic_0001>

<bundles_post_ra>
// kernel: tpu_custom_call.1
= control target key start
LH: loop header
LB: loop body
LE: loop exit
PB: predicated region body
PF: predicated region fallthrough
CT: control target
= control target key end

     0   :  { %vm56_vm0 = vcmask 130048   ;;  %vm60_vm1 = vcmask 123904   ;;  %s4863_s0 = inlined_call_operand.vmem [shape: f32[10,16], index: 0, kind: input, shape index: {}]   ;;  %s4864_s1 = inlined_call_operand.vmem [shape: f32[18,10], index: 1, kind: input, shape index: {}]   ;;  %s4865_s2 = inlined_call_operand.vmem [shape: f32[18,24], index: 2, kind: input, shape index: {}]   ;;  %s4866_s3 = inlined_call_operand.vmem [shape: f32[18,72], index: 3, kind: input, shape index: {}]   ;;  %s4867_s4 = inlined_call_operand.vmem [shape: f32[72,18], index: 4, kind: input, shape index: {}]   ;;  %s4868_s5 = inlined_call_operand.vmem [shape: f32[72,48], index: 5, kind: input, shape index: {}]   ;;  %s4869_s6 = inlined_call_operand.vmem [shape: f32[72,4], index: 6, kind: input, shape index: {}]   ;;  %s4870_s7 = inlined_call_operand.vmem [shape: f32[4,24], index: 7, kind: input, shape index: {}]   ;;  %s4871_s8 = inlined_call_operand.vmem [shape: f32[22,96], index: 8, kind: input, shape index: {}]   ;;  %s4872_s9 = inlined_call_operand.vmem [shape: f32[16,24], index: 9, kind: input, shape index: {}]   ;;  %s4873_s10 = inlined_call_operand.vmem [shape: f32[2,24,72], index: 10, kind: input, shape index: {}]   ;;  %s4874_s11 = inlined_call_operand.vmem [shape: f32[2,24,24], index: 11, kind: input, shape index: {}]   ;;  %s4875_s12 = inlined_call_operand.vmem [shape: f32[2,24,96], index: 12, kind: input, shape index: {}]   ;;  %s4876_s13 = inlined_call_operand.vmem [shape: f32[2,96,24], index: 13, kind: input, shape index: {}]   ;;  %s4877_s14 = inlined_call_operand.vmem [shape: f32[24,16], index: 14, kind: input, shape index: {}]   ;;  %s4878_s15 = inlined_call_operand.hbm [shape: f32[2,8,16], index: 15, kind: output, shape index: {}]  }
   0x1   :  { %v54_v0 = vld [vmem:[%s4863_s0] sm:$0xff]  ;;  %v55_v1 = vld [vmem:[%s4863_s0 + $0x8] sm:$0x3] }
   0x2   :  { %v57_v2 = vsel %vm56_vm0, %v54_v0, 0.0  ;;  %v67_v3 = vmul.f32 %v54_v0, %v54_v0  ;;  %v68_v4 = vmul.f32 %v55_v1, %v55_v1 }
   0x3   :  { %20 = vsyncpa [#allocation3], 0  ;;  %58 = vadd.xlane.f32.xlu0 %v57_v2  ;;  %v61_v6 = vsel %vm60_vm1, %v55_v1, 0.0  ;;  %v101_v8 = vld [vmem:[%s4872_s9] sm:$0xff]  ;;  %v102_v9 = vld [vmem:[%s4872_s9 + $0x8] sm:$0xff]  ;;  %v89_v20 = vlaneseq  ;;  %v3824_v42 = vmov 0.0|0.0  }
   0x4   :  { %v69_v5 = vsel %vm56_vm0, %v67_v3, 0.0  ;;  %v72_v7 = vsel %vm60_vm1, %v68_v4, 0.0  ;;  %v3505_v10 = vpack.c.bf16 %v102_v9, %v101_v8  ;;  %v3936_v28 = vld [vmem:[%s4871_s8] sm:$0xff]  ;;  %3513 = vmatprep.subr.bf16.mxu0 %v3824_v42  ;;  %vm3825_vm2 = vmmov 0   ;;  %v189_v52 = vld [vmem:[%s4864_s1 + $0x8] sm:$0xff]  ;;  %s3828_s27 = smov 104  }
   0x5   :  { %70 = vadd.xlane.f32.xlu1 %v69_v5  ;;  %v3928_v25 = vshrl.u32 %v89_v20, 7  ;;  %v3826_v43 = vmov 0.0   ;;  %vm204_vm3 = vcmask 1041408   ;;  %vm3827_vm4 = vmmov 1   ;;  %v188_v51 = vld [vmem:[%s4864_s1] sm:$0xff]  ;;  %v192_v58 = vld [vmem:[%s4865_s2 + $0x8] sm:$0xff] }
   0x6   :  { %3506 = vmatprep.subr.bf16.mxu1 %v3505_v10  ;;  %3090 = vmatprep.mubr.msk.f32.mxu0 %vm3825_vm2, %v3826_v43  ;;  %vm3511_vm5 = vmpackc.low %vm204_vm3, %vm3827_vm4  ;;  %vm194_vm6 = vcmask 80896   ;;  %v190_v53 = vld [vmem:[%s4864_s1 + $0x10] sm:$0x3]  ;;  %v191_v54 = vld [vmem:[%s4865_s2] sm:$0xff]  ;;  %vm319_vm7 = vcmask 195584   ;;  %vm326_vm8 = vcmask 189440  }
   0x7   :  { %62 = vadd.xlane.f32.xlu0 %v61_v6  ;;  %3508 = vmatpush3.bf16.msra.mxu1 %v3505_v10  ;;  %v3931_v27 = vsub.s32 0, %v3928_v25  ;;  %v3939_v29 = vsub.s32 1, %v3928_v25  ;;  %v3954_v44 = vsub.s32 2, %v3928_v25  ;;  %vm491_vm9 = vcmask 146432   ;;  %vm4123_vm10 = vmpackc.low %vm319_vm7, %vm319_vm7 }
   0x8   :  { %3509 = vmatprep.subr.bf16.mxu1 %v3824_v42  ;;  %vm756_vm11 = vcmask 588800   ;;  %vm763_vm12 = vcmask 582656   ;;  %vm881_vm13 = vcmask 1043456   ;;  %vm871_vm14 = vcmask 31744  }
   0x9   :  { %73 = vadd.xlane.f32.xlu1 %v72_v7  ;;  %v92_v31 = vrot.slane %v3936_v28, %v3931_v27  ;;  %v98_v34 = vrot.slane %v3936_v28, %v3939_v29  ;;  %v106_v45 = vrot.slane %v3936_v28, %v3954_v44  ;;  %vm1375_vm15 = vcmask 785408  }
   0xa   :  { %vm2742_vm4 = vcmask 130050  }
  0x90   :  { %v59_v11 = vpop.xlane.xlu0 %58 }
  0x91   :  { %v65_v12 = vmul.f32 0.0625, %v59_v11  ;;  %v381_v11 = vld [vmem:[%s4873_s10] sm:$0xff] }
  0x92   :  { %v71_v13 = vpop.xlane.xlu1 %70 }
  0x93   :  { %v79_v14 = vmul.f32 %v65_v12, %v65_v12  ;;  %v75_v15 = vmul.f32 0.0625, %v71_v13  ;;  %v77_v30 = vsub.f32 %v54_v0, %v65_v12  ;;  %v382_v12 = vld [vmem:[%s4873_s10 + $0x8] sm:$0xff] }
  0x94   :  { %v63_v16 = vpop.xlane.xlu0 %62  ;;  %v3514_v13 = vpack.c.bf16 %v382_v12, %v381_v11 }
  0x95   :  { %v81_v17 = vsub.f32 %v75_v15, %v79_v14  ;;  %v66_v18 = vmul.f32 0.0625, %v63_v16  ;;  %v383_v14 = vld [vmem:[%s4873_s10 + $0x10] sm:$0xff] }
  0x96   :  { %v74_v19 = vpop.xlane.xlu1 %73  ;;  %3515 = vmatpush3.bf16.msra.mxu0 %v3514_v13 }
  0x97   :  { %v83_v21 = vadd.f32 1e-06, %v81_v17  ;;  %v80_v22 = vmul.f32 %v66_v18, %v66_v18  ;;  %v76_v23 = vmul.f32 0.0625, %v74_v19  ;;  %v78_v35 = vsub.f32 %v55_v1, %v66_v18  ;;  %v193_v1 = vld [vmem:[%s4865_s2 + $0x10] sm:$0x3]  ;;  %3088 = vmatprep.subr.mxu0 %v3826_v43 }
  0x99   :  { %3714 = vrsqrt.f32 %v83_v21  ;;  %v82_v24 = vsub.f32 %v76_v23, %v80_v22 }
  0x9a   :  { %3089 = vmatpush3.msra.mxu0 %v383_v14 }
  0x9b   :  { %v84_v26 = vadd.f32 1e-06, %v82_v24  ;;  %3519 = vmatprep.subr.bf16.mxu0 %v3824_v42 }
  0x9d   :  { %3716 = vrsqrt.f32 %v84_v26 }
  0xa3   :  { %v3715_v32 = vpop.eup %3714 }
  0xa4   :  { %v87_v33 = vmul.f32 %v3715_v32, %v77_v30 }
  0xa6   :  { %v93_v36 = vmul.f32 %v92_v31, %v87_v33 }
  0xa7   :  { %v3717_v37 = vpop.eup %3716 }
  0xa8   :  { %v88_v38 = vmul.f32 %v3717_v37, %v78_v35  ;;  %v99_v39 = vadd.f32 %v98_v34, %v93_v36 }
  0xaa   :  { %v94_v40 = vmul.f32 %v92_v31, %v88_v38  ;;  %3068 = vmatprep.mubr.msk.f32.mxu1 %vm56_vm0, %v99_v39  ;;  %v369_v39 = vsub.s32 6, %v3928_v25 }
  0xac   :  { %v100_v41 = vadd.f32 %v98_v34, %v94_v40 }
  0xae   :  { %3069 = vmatmul.mubr.msk.f32.vlgmr.msra.gmra.mrb[0].mxu1 %vm56_vm0, %v100_v41  ;;  %v376_v41 = vsub.s32 7, %v3928_v25  ;;  %vm2737_vm0 = vcmask 130049  }
  0xaf   :  { %3075 = vmatprep.mubr.msk.f32.mxu1 %vm3825_vm2, %v3826_v43 }
 0x181   :  { %v3070_v46 = vpop.f32.mrb[0].mxu1 }
 0x182   :  { %v185_v47 = vadd.f32 %v3070_v46, %v106_v45  ;;  %v179_v48 = vpop.f32.mrb[1].mxu1  ;;  %v370_v46 = vrot.slane %v3936_v28, %v369_v39 }
 0x183   :  { %v180_v49 = vadd.f32 %v179_v48, %v106_v45 }
 0x185   :  { %v3510_v50 = vpack.c.bf16 %v185_v47, %v180_v49  ;;  %v377_v49 = vrot.slane %v3936_v28, %v376_v41 }
 0x187   :  { %3512 = vmatpush3.bf16.msk.msra.mxu1 %vm3511_vm5, %v3510_v50 }
 0x188   :  { %3516 = vmatprep.subr.bf16.mxu1 %v3824_v42 }
 0x18a   :  { %3076 = vmatmul.mubr.msk.f32.vlgmr.msra.gmra.mrb[2].mxu1 %vm194_vm6, %v188_v51 }
 0x18b   :  { %3078 = vmatprep.mubr.msk.f32.mxu1 %vm3825_vm2, %v3826_v43 }
 0x18e   :  { %3079 = vmatmul.mubr.msk.f32.gmra.mrb[4].mxu1 %vm194_vm6, %v189_v52 }
 0x18f   :  { %3081 = vmatprep.mubr.msk.f32.mxu1 %vm3825_vm2, %v3826_v43 }
 0x192   :  { %3082 = vmatmul.mubr.msk.f32.gmra.mrb[6].mxu1 %vm194_vm6, %v190_v53 }
 0x193   :  { %3105 = vmatprep.mubr.msk.f32.mxu1 %vm3825_vm2, %v3826_v43 }
 0x25d   :  { %v274_v55 = vpop.f32.mrb[2].mxu1 }
 0x25e   :  { %v3978_v56 = vadd.f32 %v274_v55, %v191_v54  ;;  %v3077_v57 = vpop.f32.mrb[3].mxu1 }
 0x260   :  { %v320_v59 = vsel %vm319_vm7, %v3978_v56, 0.0  ;;  %v334_v60 = vmul.f32 %v3978_v56, %v3978_v56 }
 0x261   :  { %321 = vadd.xlane.f32.xlu0 %v320_v59  ;;  %v279_v61 = vpop.f32.mrb[4].mxu1 }
 0x262   :  { %v3987_v62 = vadd.f32 %v279_v61, %v192_v58  ;;  %v3080_v63 = vpop.f32.mrb[5].mxu1  ;;  %v337_v0 = vsel %vm319_vm7, %v334_v60, 0.0 }
 0x263   :  { %338 = vadd.xlane.f32.xlu1 %v337_v0  ;;  %v4039_v63 = vld [vmem:[%s4871_s8 + $0x8] sm:$0xff] }
 0x264   :  { %v323_v2 = vsel %vm319_vm7, %v3987_v62, 0.0  ;;  %v335_v3 = vmul.f32 %v3987_v62, %v3987_v62 }
 0x265   :  { %324 = vadd.xlane.f32.xlu0 %v323_v2  ;;  %v284_v4 = vpop.f32.mrb[6].mxu1 }
 0x266   :  { %v3997_v5 = vadd.f32 %v284_v4, %v193_v1  ;;  %v340_v6 = vsel %vm319_vm7, %v335_v3, 0.0  ;;  %v3083_v7 = vpop.f32.mrb[7].mxu1  ;;  %v387_v1 = vrot.slane %v4039_v63, %v3954_v44 }
 0x267   :  { %341 = vadd.xlane.f32.xlu1 %v340_v6 }
 0x268   :  { %v327_v8 = vsel %vm326_vm8, %v3997_v5, 0.0  ;;  %v336_v9 = vmul.f32 %v3997_v5, %v3997_v5 }
 0x269   :  { %328 = vadd.xlane.f32.xlu0 %v327_v8 }
 0x26a   :  { %v343_v10 = vsel %vm326_vm8, %v336_v9, 0.0 }
 0x26b   :  { %344 = vadd.xlane.f32.xlu1 %v343_v10 }
 0x2ee   :  { %v322_v15 = vpop.xlane.xlu0 %321 }
 0x2ef   :  { %v331_v16 = vmul.f32 0.041666668, %v322_v15 }
 0x2f0   :  { %v339_v17 = vpop.xlane.xlu1 %338 }
 0x2f1   :  { %v352_v18 = vmul.f32 %v331_v16, %v331_v16  ;;  %v346_v19 = vmul.f32 0.041666668, %v339_v17  ;;  %v349_v45 = vsub.f32 %v3978_v56, %v331_v16  ;;  %v291_v16 = vld [vmem:[%s4867_s4] sm:$0xff] }
 0x2f2   :  { %v325_v20 = vpop.xlane.xlu0 %324 }
 0x2f3   :  { %v355_v21 = vsub.f32 %v346_v19, %v352_v18  ;;  %v332_v22 = vmul.f32 0.041666668, %v325_v20  ;;  %v292_v18 = vld [vmem:[%s4867_s4 + $0x8] sm:$0xff]  ;;  %v293_v19 = vld [vmem:[%s4867_s4 + $0x10] sm:$0xff]  ;;  %v294_v20 = vld [vmem:[%s4867_s4 + $0x18] sm:$0xff] }
 0x2f4   :  { %v342_v23 = vpop.xlane.xlu1 %341 }
 0x2f5   :  { %v358_v24 = vadd.f32 1e-06, %v355_v21  ;;  %v353_v26 = vmul.f32 %v332_v22, %v332_v22  ;;  %v347_v30 = vmul.f32 0.041666668, %v342_v23  ;;  %v350_v50 = vsub.f32 %v3987_v62, %v332_v22  ;;  %v295_v21 = vld [vmem:[%s4867_s4 + $0x20] sm:$0xff]  ;;  %v296_v22 = vld [vmem:[%s4867_s4 + $0x28] sm:$0xff] }
 0x2f6   :  { %v329_v31 = vpop.xlane.xlu0 %328  ;;  %v297_v23 = vld [vmem:[%s4867_s4 + $0x30] sm:$0xff] }
 0x2f7   :  { %3718 = vrsqrt.f32 %v358_v24  ;;  %v356_v32 = vsub.f32 %v347_v30, %v353_v26  ;;  %v333_v33 = vmul.f32 0.041666668, %v329_v31  ;;  %v298_v24 = vld [vmem:[%s4867_s4 + $0x38] sm:$0xff]  ;;  %v299_v26 = vld [vmem:[%s4867_s4 + $0x40] sm:$0xff] }
 0x2f8   :  { %v345_v34 = vpop.xlane.xlu1 %344 }
 0x2f9   :  { %v359_v35 = vadd.f32 1e-06, %v356_v32  ;;  %v354_v36 = vmul.f32 %v333_v33, %v333_v33  ;;  %v348_v37 = vmul.f32 0.041666668, %v345_v34  ;;  %v351_v55 = vsub.f32 %v3997_v5, %v333_v33  ;;  %v300_v32 = vld [vmem:[%s4868_s5] sm:$0xff]  ;;  %v301_v33 = vld [vmem:[%s4868_s5 + $0x8] sm:$0xff] }
 0x2fb   :  { %3720 = vrsqrt.f32 %v359_v35  ;;  %v357_v38 = vsub.f32 %v348_v37, %v354_v36 }
 0x2fd   :  { %v360_v40 = vadd.f32 1e-06, %v357_v38 }
 0x2ff   :  { %3722 = vrsqrt.f32 %v360_v40 }
 0x301   :  { %v3719_v47 = vpop.eup %3718 }
 0x302   :  { %v364_v48 = vmul.f32 %v3719_v47, %v349_v45 }
 0x304   :  { %v371_v51 = vmul.f32 %v370_v46, %v364_v48  ;;  %v302_v48 = vld [vmem:[%s4868_s5 + $0x10] sm:$0xff] }
 0x305   :  { %v3721_v52 = vpop.eup %3720 }
 0x306   :  { %v378_v53 = vadd.f32 %v377_v49, %v371_v51  ;;  %v365_v54 = vmul.f32 %v3721_v52, %v350_v50 }
 0x308   :  { %3091 = vmatmul.mubr.msk.f32.vlgmr.msra.gmra.mrb[0].mxu0 %vm319_vm7, %v378_v53  ;;  %v372_v57 = vmul.f32 %v370_v46, %v365_v54 }
 0x309   :  { %v3723_v58 = vpop.eup %3722  ;;  %3093 = vmatprep.mubr.msk.f32.mxu0 %vm3825_vm2, %v3826_v43 }
 0x30a   :  { %v379_v59 = vadd.f32 %v377_v49, %v372_v57  ;;  %v366_v60 = vmul.f32 %v3723_v58, %v351_v55 }
 0x30c   :  { %3094 = vmatmul.mubr.msk.f32.gmra.mrb[2].mxu0 %vm319_vm7, %v379_v59  ;;  %v373_v28 = vmul.f32 %v370_v46, %v366_v60  ;;  %v304_v59 = vld [vmem:[%s4868_s5 + $0x20] sm:$0xff]  ;;  %v305_v60 = vld [vmem:[%s4868_s5 + $0x28] sm:$0xff] }
 0x30d   :  { %3096 = vmatprep.mubr.msk.f32.mxu0 %vm3825_vm2, %v3826_v43 }
 0x30e   :  { %v380_v61 = vadd.f32 %v377_v49, %v373_v28  ;;  %v303_v49 = vld [vmem:[%s4868_s5 + $0x18] sm:$0xff] }
 0x310   :  { %3097 = vmatmul.mubr.msk.f32.gmra.mrb[4].mxu0 %vm319_vm7, %v380_v61 }
 0x311   :  { %3150 = vmatprep.mubr.msk.f32.mxu0 %vm3825_vm2, %v3826_v43 }
 0x3db   :  { %v463_v0 = vpop.f32.mrb[0].mxu0 }
 0x3dc   :  { %v3092_v2 = vpop.f32.mrb[1].mxu0  ;;  %v4043_v4 = vadd.f32 %v463_v0, %v387_v1 }
 0x3df   :  { %v468_v3 = vpop.f32.mrb[2].mxu0 }
 0x3e0   :  { %v4045_v6 = vadd.f32 %v468_v3, %v387_v1  ;;  %v3095_v7 = vpop.f32.mrb[3].mxu0 }
 0x3e2   :  { %v3664_v8 = vpack.i.bf16 %v4045_v6, %v4043_v4 }
 0x3e3   :  { %v473_v9 = vpop.f32.mrb[4].mxu0 }
 0x3e4   :  { %v4049_v10 = vadd.f32 %v473_v9, %v387_v1  ;;  %3665 = vrot.lane.b32.xlu0 %v3664_v8, %s3828_s27  ;;  %v3098_v11 = vpop.f32.mrb[5].mxu0  ;;  %v4162_v9 = vld [vmem:[%s4868_s5 + $0x30] sm:$0xff] }
 0x3e5   :  { %v4167_v11 = vld [vmem:[%s4868_s5 + $0x38] sm:$0xff] }
 0x3e6   :  { %487 = vrot.lane.b32.xlu1 %v4049_v10, %s3828_s27 }
 0x456   :  { %v3666_v12 = vpop.permute.xlu0 %3665 }
 0x457   :  { %v3668_v13 = vunpack.i.h.bf16 %v3666_v12  ;;  %v3667_v14 = vunpack.i.l.bf16 %v3666_v12 }
 0x458   :  { %v488_v17 = vpop.permute.xlu1 %487 }
 0x459   :  { %v3517_v15 = vpack.c.bf16 %v3668_v13, %v3667_v14 }
 0x45b   :  { %3518 = vmatpush3.bf16.msra.mxu1 %v3517_v15 }
 0x45c   :  { %3103 = vmatprep.subr.mxu1 %v3826_v43 }
 0x45f   :  { %3104 = vmatpush3.msk.msra.mxu1 %vm204_vm3, %v488_v17 }
 0x460   :  { %3106 = vmatmul.mubr.msk.f32.vlgmr.msra.gmra.mrb[8].mxu1 %vm491_vm9, %v291_v16  ;;  %3535 = vmatprep.subr.bf16.mxu1 %v3824_v42 }
 0x461   :  { %3108 = vmatprep.mubr.msk.f32.mxu1 %vm3825_vm2, %v3826_v43 }
 0x464   :  { %3109 = vmatmul.mubr.msk.f32.gmra.mrb[10].mxu1 %vm491_vm9, %v292_v18 }
 0x465   :  { %3111 = vmatprep.mubr.msk.f32.mxu1 %vm3825_vm2, %v3826_v43 }
 0x468   :  { %3112 = vmatmul.mubr.msk.f32.gmra.mrb[12].mxu1 %vm491_vm9, %v293_v19 }
 0x469   :  { %3114 = vmatprep.mubr.msk.f32.mxu1 %vm3825_vm2, %v3826_v43 }
 0x46c   :  { %3115 = vmatmul.mubr.msk.f32.gmra.mrb[14].mxu1 %vm491_vm9, %v294_v20  ;;  %v4177_v20 = vld [vmem:[%s4868_s5 + $0x40] sm:$0xff] }
 0x46d   :  { %3117 = vmatprep.mubr.msk.f32.mxu1 %vm3825_vm2, %v3826_v43 }
 0x470   :  { %3118 = vmatmul.mubr.msk.f32.gmra.mrb[16].mxu1 %vm491_vm9, %v295_v21 }
 0x471   :  { %3120 = vmatprep.mubr.msk.f32.mxu1 %vm3825_vm2, %v3826_v43 }
 0x474   :  { %3121 = vmatmul.mubr.msk.f32.gmra.mrb[18].mxu1 %vm491_vm9, %v296_v22  ;;  %v477_v22 = vmul.f32 0.4082483, %v4043_v4  ;;  %v309_v4 = vld [vmem:[%s4869_s6] sm:$0xff] }
 0x475   :  { %3123 = vmatprep.mubr.msk.f32.mxu1 %vm3825_vm2, %v3826_v43 }
 0x478   :  { %3124 = vmatmul.mubr.msk.f32.gmra.mrb[20].mxu1 %vm491_vm9, %v297_v23  ;;  %v478_v23 = vmul.f32 0.4082483, %v4045_v6  ;;  %v310_v6 = vld [vmem:[%s4869_s6 + $0x8] sm:$0xff] }
 0x479   :  { %3126 = vmatprep.mubr.msk.f32.mxu1 %vm3825_vm2, %v3826_v43 }
 0x47c   :  { %3127 = vmatmul.mubr.msk.f32.gmra.mrb[22].mxu1 %vm491_vm9, %v298_v24  ;;  %v479_v24 = vmul.f32 0.4082483, %v4049_v10  ;;  %v312_v10 = vld [vmem:[%s4869_s6 + $0x18] sm:$0xff] }
 0x47d   :  { %3129 = vmatprep.mubr.msk.f32.mxu1 %vm3825_vm2, %v3826_v43 }
 0x480   :  { %3130 = vmatmul.mubr.msk.f32.gmra.mrb[24].mxu1 %vm491_vm9, %v299_v26  ;;  %v311_v26 = vld [vmem:[%s4869_s6 + $0x10] sm:$0xff] }
 0x481   :  { %3177 = vmatprep.mubr.msk.f32.mxu1 %vm3825_vm2, %v3826_v43 }
 0x533   :  { %v587_v30 = vpop.f32.mrb[8].mxu1 }
 0x534   :  { %v3107_v31 = vpop.f32.mrb[9].mxu1  ;;  %v4117_v35 = vmul.f32 %v587_v30, %v300_v32  ;;  %v4204_v30 = vpack.c.bf16 %v310_v6, %v309_v4  ;;  %v4275_v4 = vld [vmem:[%s4866_s3 + $0x10] sm:$0x3] }
 0x535   :  { %v4210_v31 = vpack.c.bf16 %v312_v10, %v311_v26 }
 0x536   :  { %3537 = vmatpush3.bf16.msra.mxu1 %v4204_v30 }
 0x537   :  { %v592_v34 = vpop.f32.mrb[10].mxu1  ;;  %3538 = vmatprep.subr.bf16.mxu1 %v3824_v42 }
 0x538   :  { %v4119_v36 = vmul.f32 %v592_v34, %v301_v33  ;;  %v3110_v37 = vpop.f32.mrb[11].mxu1 }
 0x53a   :  { %v3669_v40 = vpack.i.bf16 %v4119_v36, %v4117_v35  ;;  %v3520_v45 = vpack.c.bf16 %v4119_v36, %v4117_v35  ;;  %3540 = vmatpush3.bf16.msra.mxu1 %v4210_v31  ;;  %v315_v35 = vld [vmem:[%s4869_s6 + $0x30] sm:$0xff]  ;;  %v316_v36 = vld [vmem:[%s4869_s6 + $0x38] sm:$0xff] }
 0x53b   :  { %v597_v46 = vpop.f32.mrb[12].mxu1  ;;  %3541 = vmatprep.subr.bf16.mxu1 %v3824_v42 }
 0x53c   :  { %v3113_v47 = vpop.f32.mrb[13].mxu1  ;;  %3522 = vmatpush3.bf16.xpose.msk.msra.mxu0 %vm4123_vm10, %v3520_v45  ;;  %v4140_v51 = vmul.f32 %v597_v46, %v302_v48 }
 0x53d   :  { %3523 = vmatprep.subr.bf16.mxu0 %v3824_v42 }
 0x53f   :  { %v602_v50 = vpop.f32.mrb[14].mxu1 }
 0x540   :  { %v4142_v52 = vmul.f32 %v602_v50, %v303_v49  ;;  %v3116_v53 = vpop.f32.mrb[15].mxu1  ;;  %v313_v50 = vld [vmem:[%s4869_s6 + $0x20] sm:$0xff] }
 0x541   :  { %v314_v53 = vld [vmem:[%s4869_s6 + $0x28] sm:$0xff] }
 0x542   :  { %v3674_v54 = vpack.i.bf16 %v4142_v52, %v4140_v51  ;;  %v3524_v55 = vpack.c.bf16 %v4142_v52, %v4140_v51  ;;  %v4259_v51 = vld [vmem:[%s4866_s3] sm:$0xff] }
 0x543   :  { %v607_v57 = vpop.f32.mrb[16].mxu1 }
 0x544   :  { %v3119_v58 = vpop.f32.mrb[17].mxu1  ;;  %3526 = vmatpush3.bf16.xpose.msk.msra.mxu0 %vm4123_vm10, %v3524_v55  ;;  %v635_v61 = vmul.f32 %v607_v57, %v304_v59  ;;  %v4228_v55 = vpack.c.bf16 %v314_v53, %v313_v50  ;;  %v4248_v57 = vld [vmem:[%s4869_s6 + $0x40] sm:$0xff] }
 0x545   :  { %3527 = vmatprep.subr.bf16.mxu0 %v3824_v42  ;;  %v1075_v53 = vld [vmem:[%s4874_s11] sm:$0xff] }
 0x546   :  { %3543 = vmatpush3.bf16.msra.mxu1 %v4228_v55 }
 0x547   :  { %v612_v28 = vpop.f32.mrb[18].mxu1  ;;  %3544 = vmatprep.subr.bf16.mxu1 %v3824_v42 }
 0x548   :  { %v636_v0 = vmul.f32 %v612_v28, %v305_v60  ;;  %v3122_v1 = vpop.f32.mrb[19].mxu1 }
 0x54a   :  { %v3679_v2 = vpack.i.bf16 %v636_v0, %v635_v61  ;;  %v3528_v3 = vpack.c.bf16 %v636_v0, %v635_v61 }
 0x54b   :  { %v617_v7 = vpop.f32.mrb[20].mxu1 }
 0x54c   :  { %v3125_v8 = vpop.f32.mrb[21].mxu1  ;;  %3530 = vmatpush3.bf16.xpose.msk.msra.mxu0 %vm4123_vm10, %v3528_v3  ;;  %v637_v13 = vmul.f32 %v617_v7, %v4162_v9 }
 0x54d   :  { %3531 = vmatprep.subr.bf16.mxu0 %v3824_v42 }
 0x54f   :  { %v622_v12 = vpop.f32.mrb[22].mxu1 }
 0x550   :  { %v638_v14 = vmul.f32 %v622_v12, %v4167_v11  ;;  %v3128_v15 = vpop.f32.mrb[23].mxu1 }
 0x552   :  { %v3684_v16 = vpack.i.bf16 %v638_v14, %v637_v13  ;;  %v3532_v17 = vpack.c.bf16 %v638_v14, %v637_v13 }
 0x553   :  { %v627_v18 = vpop.f32.mrb[24].mxu1 }
 0x554   :  { %3534 = vmatpush3.bf16.xpose.msk.msra.mxu0 %vm4123_vm10, %v3532_v17  ;;  %v3131_v19 = vpop.f32.mrb[25].mxu1  ;;  %v639_v21 = vmul.f32 %v627_v18, %v4177_v20  ;;  %v4265_v18 = vld [vmem:[%s4866_s3 + $0x8] sm:$0xff] }
 0x555   :  { %3148 = vmatprep.subr.mxu0 %v3826_v43 }
 0x55c   :  { %3149 = vmatpush3.xpose.msk.msra.mxu0 %vm319_vm7, %v639_v21 }
 0x55d   :  { %3186 = vmatprep.subr.mxu0 %v3826_v43 }
 0x55f   :  { %3151 = vmatmul.mubr.msk.f32.vlgmr.msra.gmra.mrb[6].mxu0 %vm319_vm7, %v477_v22 }
 0x560   :  { %3153 = vmatprep.mubr.msk.f32.mxu0 %vm3825_vm2, %v3826_v43 }
 0x563   :  { %3154 = vmatmul.mubr.msk.f32.gmra.mrb[8].mxu0 %vm319_vm7, %v478_v23 }
 0x564   :  { %3156 = vmatprep.mubr.msk.f32.mxu0 %vm3825_vm2, %v3826_v43 }
 0x567   :  { %3157 = vmatmul.mubr.msk.f32.gmra.mrb[10].mxu0 %vm319_vm7, %v479_v24 }
 0x568   :  { %3188 = vmatprep.mubr.msk.f32.mxu0 %vm3825_vm2, %v3826_v43 }
 0x632   :  { %v742_v32 = vpop.f32.mrb[6].mxu0 }
 0x633   :  { %v3152_v33 = vpop.f32.mrb[7].mxu0  ;;  %v757_v34 = vsel %vm756_vm11, %v742_v32, -inf }
 0x634   :  { %758 = vmax.xlane.f32.xlu1 %v757_v34 }
 0x636   :  { %v747_v37 = vpop.f32.mrb[8].mxu0 }
 0x637   :  { %v3155_v45 = vpop.f32.mrb[9].mxu0  ;;  %v760_v46 = vsel %vm756_vm11, %v747_v37, -inf }
 0x638   :  { %761 = vmax.xlane.f32.xlu0 %v760_v46  ;;  %v4300_v46 = vld [vmem:[%s4870_s7] sm:$0xf] }
 0x639   :  { %3187 = vmatpush3.msk.msra.mxu0 %vm881_vm13, %v4300_v46 }
 0x63a   :  { %v752_v47 = vpop.f32.mrb[10].mxu0  ;;  %3559 = vmatprep.subr.bf16.mxu0 %v3824_v42 }
 0x63b   :  { %v3158_v48 = vpop.f32.mrb[11].mxu0  ;;  %v764_v49 = vsel %vm763_vm12, %v752_v47, -inf }
 0x63c   :  { %765 = vmax.xlane.f32.xlu0 %v764_v49 }
 0x645   :  { %3670 = vrot.lane.b32.xlu1 %v3669_v40, %s3828_s27  ;;  %v4239_v40 = vpack.c.bf16 %v316_v36, %v315_v35  ;;  %v1076_v35 = vld [vmem:[%s4874_s11 + $0x8] sm:$0xff] }
 0x647   :  { %3546 = vmatpush3.bf16.msra.mxu1 %v4239_v40 }
 0x648   :  { %3175 = vmatprep.subr.mxu1 %v3826_v43 }
 0x649   :  { %3680 = vrot.lane.b32.xlu1 %v3679_v2, %s3828_s27 }
 0x64b   :  { %3176 = vmatpush3.msra.mxu1 %v4248_v57 }
 0x64c   :  { %3547 = vmatprep.subr.bf16.mxu1 %v3824_v42 }
 0x64d   :  { %3685 = vrot.lane.b32.xlu1 %v3684_v16, %s3828_s27 }
 0x651   :  { %981 = vrot.lane.b32.xlu1 %v639_v21, %s3828_s27 }
 0x652   :  { %3675 = vrot.lane.b32.xlu0 %v3674_v54, %s3828_s27 }
 0x6c1   :  { %v759_v58 = vpop.xlane.xlu1 %758 }
 0x6c2   :  { %v767_v59 = vsub.f32 %v742_v32, %v759_v58 }
 0x6c4   :  { %v770_v60 = vmul.f32 1.442695, %v767_v59  ;;  %v3560_v59 = vpack.c.bf16 %v1076_v35, %v1075_v53 }
 0x6c5   :  { %v762_v28 = vpop.xlane.xlu0 %761  ;;  %v3671_v3 = vpop.permute.xlu1 %3670 }
 0x6c6   :  { %3724 = vpow2.f32 %v770_v60  ;;  %v768_v61 = vsub.f32 %v747_v37, %v762_v28  ;;  %v3673_v52 = vunpack.i.h.bf16 %v3671_v3  ;;  %v3672_v54 = vunpack.i.l.bf16 %v3671_v3 }
 0x6c8   :  { %v772_v0 = vmul.f32 1.442695, %v768_v61  ;;  %v3548_v15 = vpack.c.bf16 %v3673_v52, %v3672_v54  ;;  %v1077_v54 = vld [vmem:[%s4874_s11 + $0x10] sm:$0xff] }
 0x6c9   :  { %v766_v1 = vpop.xlane.xlu0 %765  ;;  %v3681_v14 = vpop.permute.xlu1 %3680 }
 0x6ca   :  { %3726 = vpow2.f32 %v772_v0  ;;  %v769_v2 = vsub.f32 %v752_v47, %v766_v1  ;;  %v3683_v22 = vunpack.i.h.bf16 %v3681_v14  ;;  %v3682_v23 = vunpack.i.l.bf16 %v3681_v14 }
 0x6cc   :  { %v774_v7 = vmul.f32 1.442695, %v769_v2  ;;  %v3554_v32 = vpack.c.bf16 %v3683_v22, %v3682_v23  ;;  %v4335_v22 = vsub.s32 3, %v3928_v25 }
 0x6cd   :  { %v3676_v8 = vpop.permute.xlu0 %3675  ;;  %v3686_v6 = vpop.permute.xlu1 %3685 }
 0x6ce   :  { %3728 = vpow2.f32 %v774_v7  ;;  %v3678_v16 = vunpack.i.h.bf16 %v3676_v8  ;;  %v3677_v17 = vunpack.i.l.bf16 %v3676_v8  ;;  %v3688_v33 = vunpack.i.h.bf16 %v3686_v6 }
 0x6cf   :  { %v3687_v34 = vunpack.i.l.bf16 %v3686_v6  ;;  %v1173_v23 = vrot.slane %v4039_v63, %v4335_v22 }
 0x6d0   :  { %v3725_v12 = vpop.eup %3724  ;;  %v3551_v24 = vpack.c.bf16 %v3678_v16, %v3677_v17 }
 0x6d1   :  { %v776_v13 = vmul.f32 %v3725_v12, %v4259_v51  ;;  %v3557_v37 = vpack.c.bf16 %v3688_v33, %v3687_v34  ;;  %v982_v45 = vpop.permute.xlu1 %981 }
 0x6d3   :  { %3178 = vmatmul.mubr.msk.f32.vlgmr.msra.gmra.mrb[26].mxu1 %vm756_vm11, %v776_v13 }
 0x6d4   :  { %v3727_v19 = vpop.eup %3726  ;;  %3549 = vmatpush3.bf16.msra.mxu1 %v3548_v15  ;;  %3180 = vmatprep.mubr.msk.f32.mxu1 %vm3825_vm2, %v3826_v43 }
 0x6d5   :  { %3550 = vmatprep.subr.bf16.mxu1 %v3824_v42  ;;  %v777_v21 = vmul.f32 %v3727_v19, %v4265_v18 }
 0x6d7   :  { %3181 = vmatmul.mubr.msk.f32.gmra.mrb[28].mxu1 %vm756_vm11, %v777_v21 }
 0x6d8   :  { %v3729_v26 = vpop.eup %3728  ;;  %3552 = vmatpush3.bf16.msra.mxu1 %v3551_v24  ;;  %3183 = vmatprep.mubr.msk.f32.mxu1 %vm3825_vm2, %v3826_v43 }
 0x6d9   :  { %3553 = vmatprep.subr.bf16.mxu1 %v3824_v42  ;;  %v778_v10 = vmul.f32 %v3729_v26, %v4275_v4 }
 0x6db   :  { %3184 = vmatmul.mubr.msk.f32.gmra.mrb[30].mxu1 %vm756_vm11, %v778_v10 }
 0x6dc   :  { %3555 = vmatpush3.bf16.msra.mxu1 %v3554_v32  ;;  %3215 = vmatprep.mubr.msk.f32.mxu1 %vm3825_vm2, %v3826_v43 }
 0x6dd   :  { %3556 = vmatprep.subr.bf16.mxu1 %v3824_v42 }
 0x6e0   :  { %3558 = vmatpush3.bf16.msra.mxu1 %v3557_v37 }
 0x6e1   :  { %3213 = vmatprep.subr.mxu1 %v3826_v43 }
 0x6e4   :  { %3214 = vmatpush3.msra.mxu1 %v982_v45 }
 0x6e5   :  { %3216 = vmatmul.mubr.msk.f32.vlgmr.msra.gmra.mrb[32].mxu1 %vm756_vm11, %v776_v13  ;;  %3565 = vmatprep.subr.bf16.mxu1 %v3824_v42 }
 0x6e6   :  { %3218 = vmatprep.mubr.msk.f32.mxu1 %vm3825_vm2, %v3826_v43 }
 0x6e9   :  { %3219 = vmatmul.mubr.msk.f32.gmra.mrb[34].mxu1 %vm756_vm11, %v777_v21 }
 0x6ea   :  { %3221 = vmatprep.mubr.msk.f32.mxu1 %vm3825_vm2, %v3826_v43 }
 0x6ed   :  { %3222 = vmatmul.mubr.msk.f32.gmra.mrb[36].mxu1 %vm756_vm11, %v778_v10 }
 0x6ee   :  { %3278 = vmatprep.mubr.msk.f32.mxu1 %vm3825_vm2, %v3826_v43 }
 0x7a6   :  { %v854_v47 = vpop.f32.mrb[26].mxu1 }
 0x7a7   :  { %3730 = vrcp.f32 %v854_v47  ;;  %v3179_v48 = vpop.f32.mrb[27].mxu1 }
 0x7aa   :  { %v859_v49 = vpop.f32.mrb[28].mxu1 }
 0x7ab   :  { %3732 = vrcp.f32 %v859_v49  ;;  %v3182_v50 = vpop.f32.mrb[29].mxu1 }
 0x7ae   :  { %v864_v36 = vpop.f32.mrb[30].mxu1 }
 0x7af   :  { %3734 = vrcp.f32 %v864_v36  ;;  %v3185_v58 = vpop.f32.mrb[31].mxu1 }
 0x7b1   :  { %v3731_v60 = vpop.eup %3730 }
 0x7b2   :  { %3189 = vmatmul.mubr.msk.f32.vlgmr.msra.gmra.mrb[12].mxu0 %vm871_vm14, %v3731_v60  ;;  %v1236_v60 = vld [vmem:[%s4875_s12] sm:$0xff] }
 0x7b3   :  { %3191 = vmatprep.mubr.msk.f32.mxu0 %vm3825_vm2, %v3826_v43  ;;  %3561 = vmatpush3.bf16.msra.mxu0 %v3560_v59 }
 0x7b4   :  { %3228 = vmatprep.subr.mxu0 %v3826_v43 }
 0x7b5   :  { %v3733_v28 = vpop.eup %3732 }
 0x7b6   :  { %3192 = vmatmul.mubr.msk.f32.gmra.mrb[14].mxu0 %vm871_vm14, %v3733_v28  ;;  %v1237_v28 = vld [vmem:[%s4875_s12 + $0x8] sm:$0xff] }
 0x7b7   :  { %3194 = vmatprep.mubr.msk.f32.mxu0 %vm3825_vm2, %v3826_v43  ;;  %3229 = vmatpush3.msra.mxu0 %v1077_v54 }
 0x7b8   :  { %v1058_v61 = vpop.f32.mrb[32].mxu1  ;;  %3562 = vmatprep.subr.bf16.mxu0 %v3824_v42 }
 0x7b9   :  { %v3735_v0 = vpop.eup %3734  ;;  %v3217_v1 = vpop.f32.mrb[33].mxu1 }
 0x7ba   :  { %3195 = vmatmul.mubr.msk.f32.gmra.mrb[16].mxu0 %vm871_vm14, %v3735_v0  ;;  %v1238_v0 = vld [vmem:[%s4875_s12 + $0x10] sm:$0xff] }
 0x7bb   :  { %3230 = vmatprep.mubr.msk.f32.mxu0 %vm3825_vm2, %v3826_v43 }
 0x7bc   :  { %v1063_v2 = vpop.f32.mrb[34].mxu1 }
 0x7bd   :  { %v3220_v3 = vpop.f32.mrb[35].mxu1 }
 0x7c0   :  { %v1068_v7 = vpop.f32.mrb[36].mxu1 }
 0x7c1   :  { %v3223_v52 = vpop.f32.mrb[37].mxu1 }
 0x885   :  { %v951_v8 = vpop.f32.mrb[12].mxu0 }
 0x886   :  { %v1072_v12 = vmul.f32 %v1058_v61, %v951_v8  ;;  %v3190_v13 = vpop.f32.mrb[13].mxu0  ;;  %v3563_v61 = vpack.c.bf16 %v1237_v28, %v1236_v60 }
 0x888   :  { %3231 = vmatmul.mubr.msk.f32.vlgmr.msra.gmra.mrb[18].mxu0 %vm319_vm7, %v1072_v12 }
 0x889   :  { %v956_v14 = vpop.f32.mrb[14].mxu0  ;;  %3233 = vmatprep.mubr.msk.f32.mxu0 %vm3825_vm2, %v3826_v43  ;;  %3564 = vmatpush3.bf16.msra.mxu0 %v3563_v61 }
 0x88a   :  { %v1073_v15 = vmul.f32 %v1063_v2, %v956_v14  ;;  %v3193_v16 = vpop.f32.mrb[15].mxu0  ;;  %3243 = vmatprep.subr.mxu0 %v3826_v43 }
 0x88c   :  { %3234 = vmatmul.mubr.msk.f32.gmra.mrb[20].mxu0 %vm319_vm7, %v1073_v15 }
 0x88d   :  { %v961_v17 = vpop.f32.mrb[16].mxu0  ;;  %3236 = vmatprep.mubr.msk.f32.mxu0 %vm3825_vm2, %v3826_v43  ;;  %3244 = vmatpush3.msra.mxu0 %v1238_v0 }
 0x88e   :  { %v1074_v19 = vmul.f32 %v1068_v7, %v961_v17  ;;  %v3196_v21 = vpop.f32.mrb[17].mxu0  ;;  %3583 = vmatprep.subr.bf16.mxu0 %v3824_v42 }
 0x890   :  { %3237 = vmatmul.mubr.msk.f32.gmra.mrb[22].mxu0 %vm319_vm7, %v1074_v19 }
 0x891   :  { %3245 = vmatprep.mubr.msk.f32.mxu0 %vm3825_vm2, %v3826_v43 }
 0x95b   :  { %v1153_v24 = vpop.f32.mrb[18].mxu0 }
 0x95c   :  { %v1167_v6 = vadd.f32 %v1153_v24, %v3978_v56  ;;  %v3232_v26 = vpop.f32.mrb[19].mxu0 }
 0x95e   :  { %v4340_v10 = vadd.f32 %v1173_v23, %v1167_v6 }
 0x95f   :  { %v1158_v32 = vpop.f32.mrb[20].mxu0 }
 0x960   :  { %v1168_v33 = vadd.f32 %v1158_v32, %v3987_v62  ;;  %v3235_v34 = vpop.f32.mrb[21].mxu0  ;;  %v1177_v37 = vsel %vm319_vm7, %v4340_v10, 0.0  ;;  %v1189_v45 = vmul.f32 %v4340_v10, %v4340_v10 }
 0x961   :  { %1178 = vadd.xlane.f32.xlu0 %v1177_v37  ;;  %v1225_v34 = vrot.slane %v4039_v63, %v3931_v27 }
 0x962   :  { %v4347_v47 = vadd.f32 %v1173_v23, %v1168_v33  ;;  %v1192_v48 = vsel %vm319_vm7, %v1189_v45, 0.0 }
 0x963   :  { %1193 = vadd.xlane.f32.xlu1 %v1192_v48  ;;  %v1163_v56 = vpop.f32.mrb[22].mxu0  ;;  %v1232_v48 = vrot.slane %v4039_v63, %v3939_v29 }
 0x964   :  { %v1169_v49 = vadd.f32 %v1163_v56, %v3997_v5  ;;  %v3238_v50 = vpop.f32.mrb[23].mxu0  ;;  %v1180_v62 = vsel %vm319_vm7, %v4347_v47, 0.0  ;;  %v1190_v53 = vmul.f32 %v4347_v47, %v4347_v47 }
 0x965   :  { %1181 = vadd.xlane.f32.xlu0 %v1180_v62 }
 0x966   :  { %v4355_v35 = vadd.f32 %v1173_v23, %v1169_v49  ;;  %v1195_v36 = vsel %vm319_vm7, %v1190_v53, 0.0 }
 0x968   :  { %v1191_v58 = vmul.f32 %v4355_v35, %v4355_v35  ;;  %v1183_v5 = vsel %vm326_vm8, %v4355_v35, 0.0 }
 0x969   :  { %1196 = vadd.xlane.f32.xlu0 %v1195_v36 }
 0x96a   :  { %v1198_v59 = vsel %vm326_vm8, %v1191_v58, 0.0 }
 0x96b   :  { %1199 = vadd.xlane.f32.xlu1 %v1198_v59 }
 0x96d   :  { %1184 = vadd.xlane.f32.xlu0 %v1183_v5 }
 0x9ee   :  { %v1179_v1 = vpop.xlane.xlu0 %1178 }
 0x9ef   :  { %v1186_v2 = vmul.f32 0.041666668, %v1179_v1  ;;  %v1359_v1 = vld [vmem:[%s4876_s13] sm:$0xff] }
 0x9f0   :  { %v1194_v3 = vpop.xlane.xlu1 %1193 }
 0x9f1   :  { %v1207_v7 = vmul.f32 %v1186_v2, %v1186_v2  ;;  %v1201_v52 = vmul.f32 0.041666668, %v1194_v3  ;;  %v1204_v33 = vsub.f32 %v4340_v10, %v1186_v2  ;;  %v1360_v2 = vld [vmem:[%s4876_s13 + $0x8] sm:$0xff] }
 0x9f2   :  { %v1182_v54 = vpop.xlane.xlu0 %1181  ;;  %v3566_v3 = vpack.c.bf16 %v1360_v2, %v1359_v1 }
 0x9f3   :  { %v1210_v8 = vsub.f32 %v1201_v52, %v1207_v7  ;;  %v1187_v12 = vmul.f32 0.041666668, %v1182_v54  ;;  %v1361_v7 = vld [vmem:[%s4876_s13 + $0x10] sm:$0xff]  ;;  %v1362_v52 = vld [vmem:[%s4876_s13 + $0x18] sm:$0xff] }
 0x9f4   :  { %3567 = vmatpush3.bf16.msra.mxu1 %v3566_v3  ;;  %v3569_v54 = vpack.c.bf16 %v1362_v52, %v1361_v7 }
 0x9f5   :  { %v1213_v13 = vadd.f32 1e-06, %v1210_v8  ;;  %v1208_v15 = vmul.f32 %v1187_v12, %v1187_v12  ;;  %v1205_v50 = vsub.f32 %v4347_v47, %v1187_v12  ;;  %3568 = vmatprep.subr.bf16.mxu1 %v3824_v42  ;;  %v1363_v8 = vld [vmem:[%s4876_s13 + $0x20] sm:$0xff]  ;;  %v1364_v12 = vld [vmem:[%s4876_s13 + $0x28] sm:$0xff] }
 0x9f6   :  { %v1197_v14 = vpop.xlane.xlu0 %1196 }
 0x9f7   :  { %3736 = vrsqrt.f32 %v1213_v13  ;;  %v1202_v16 = vmul.f32 0.041666668, %v1197_v14  ;;  %v3572_v13 = vpack.c.bf16 %v1364_v12, %v1363_v8  ;;  %v1365_v14 = vld [vmem:[%s4876_s13 + $0x30] sm:$0xff] }
 0x9f8   :  { %v1200_v19 = vpop.xlane.xlu1 %1199  ;;  %3570 = vmatpush3.bf16.msra.mxu1 %v3569_v54 }
 0x9f9   :  { %v1211_v17 = vsub.f32 %v1202_v16, %v1208_v15  ;;  %v1203_v6 = vmul.f32 0.041666668, %v1200_v19  ;;  %3571 = vmatprep.subr.bf16.mxu1 %v3824_v42  ;;  %v1366_v15 = vld [vmem:[%s4876_s13 + $0x38] sm:$0xff]  ;;  %v1368_v19 = vld [vmem:[%s4876_s13 + $0x48] sm:$0xff] }
 0x9fa   :  { %v1185_v21 = vpop.xlane.xlu0 %1184  ;;  %v3575_v16 = vpack.c.bf16 %v1366_v15, %v1365_v14 }
 0x9fb   :  { %v1214_v23 = vadd.f32 1e-06, %v1211_v17  ;;  %v1188_v24 = vmul.f32 0.041666668, %v1185_v21  ;;  %v1367_v17 = vld [vmem:[%s4876_s13 + $0x40] sm:$0xff] }
 0x9fc   :  { %3573 = vmatpush3.bf16.msra.mxu1 %v3572_v13  ;;  %v3578_v21 = vpack.c.bf16 %v1368_v19, %v1367_v17 }
 0x9fd   :  { %3738 = vrsqrt.f32 %v1214_v23  ;;  %v1209_v26 = vmul.f32 %v1188_v24, %v1188_v24  ;;  %v1206_v59 = vsub.f32 %v4355_v35, %v1188_v24  ;;  %3574 = vmatprep.subr.bf16.mxu1 %v3824_v42  ;;  %v1369_v23 = vld [vmem:[%s4876_s13 + $0x50] sm:$0xff]  ;;  %v1370_v24 = vld [vmem:[%s4876_s13 + $0x58] sm:$0xff] }
 0x9ff   :  { %v1212_v32 = vsub.f32 %v1203_v6, %v1209_v26  ;;  %v3581_v6 = vpack.c.bf16 %v1370_v24, %v1369_v23  ;;  %v4433_v26 = vsub.s32 4, %v3928_v25 }
 0xa00   :  { %3576 = vmatpush3.bf16.msra.mxu1 %v3575_v16 }
 0xa01   :  { %v3737_v37 = vpop.eup %3736  ;;  %v1215_v45 = vadd.f32 1e-06, %v1212_v32  ;;  %3577 = vmatprep.subr.bf16.mxu1 %v3824_v42  ;;  %v1242_v32 = vrot.slane %v4039_v63, %v4433_v26 }
 0xa02   :  { %v1219_v56 = vmul.f32 %v3737_v37, %v1204_v33 }
 0xa03   :  { %3740 = vrsqrt.f32 %v1215_v45 }
 0xa04   :  { %v1226_v49 = vmul.f32 %v1225_v34, %v1219_v56  ;;  %3579 = vmatpush3.bf16.msra.mxu1 %v3578_v21 }
 0xa05   :  { %3580 = vmatprep.subr.bf16.mxu1 %v3824_v42 }
 0xa06   :  { %v1233_v62 = vadd.f32 %v1232_v48, %v1226_v49 }
 0xa07   :  { %v3739_v53 = vpop.eup %3738 }
 0xa08   :  { %3246 = vmatmul.mubr.msk.f32.vlgmr.msra.gmra.mrb[24].mxu0 %vm319_vm7, %v1233_v62  ;;  %v1220_v36 = vmul.f32 %v3739_v53, %v1205_v50  ;;  %3582 = vmatpush3.bf16.msra.mxu1 %v3581_v6 }
 0xa09   :  { %3248 = vmatprep.mubr.msk.f32.mxu0 %vm3825_vm2, %v3826_v43  ;;  %3589 = vmatprep.subr.bf16.mxu1 %v3824_v42 }
 0xa0a   :  { %v1227_v58 = vmul.f32 %v1225_v34, %v1220_v36 }
 0xa0c   :  { %v1234_v5 = vadd.f32 %v1232_v48, %v1227_v58 }
 0xa0d   :  { %v3741_v60 = vpop.eup %3740 }
 0xa0e   :  { %v1221_v28 = vmul.f32 %v3741_v60, %v1206_v59  ;;  %3249 = vmatmul.mubr.msk.f32.gmra.mrb[26].mxu0 %vm319_vm7, %v1234_v5 }
 0xa0f   :  { %3251 = vmatprep.mubr.msk.f32.mxu0 %vm3825_vm2, %v3826_v43 }
 0xa10   :  { %v1228_v61 = vmul.f32 %v1225_v34, %v1221_v28 }
 0xa12   :  { %v1235_v0 = vadd.f32 %v1232_v48, %v1228_v61 }
 0xa14   :  { %3252 = vmatmul.mubr.msk.f32.gmra.mrb[28].mxu0 %vm319_vm7, %v1235_v0 }
 0xa15   :  { %3293 = vmatprep.mubr.msk.f32.mxu0 %vm3825_vm2, %v3826_v43 }
 0xadb   :  { %v1318_v33 = vpop.f32.mrb[24].mxu0 }
 0xadc   :  { %v1319_v34 = vadd.f32 %v1318_v33, %v1242_v32  ;;  %v3247_v37 = vpop.f32.mrb[25].mxu0 }
 0xade   :  { %v1335_v45 = vmul.f32 0.044715, %v1319_v34  ;;  %v1332_v12 = vmul.f32 0.5, %v1319_v34 }
 0xae0   :  { %v1338_v48 = vmul.f32 %v1335_v45, %v1319_v34 }
 0xae1   :  { %v1323_v56 = vpop.f32.mrb[26].mxu0 }
 0xae2   :  { %v1341_v49 = vmul.f32 %v1338_v48, %v1319_v34  ;;  %v1324_v50 = vadd.f32 %v1323_v56, %v1242_v32  ;;  %v3250_v62 = vpop.f32.mrb[27].mxu0 }
 0xae4   :  { %v1344_v53 = vadd.f32 %v1341_v49, %v1319_v34  ;;  %v1336_v36 = vmul.f32 0.044715, %v1324_v50  ;;  %v1333_v16 = vmul.f32 0.5, %v1324_v50 }
 0xae6   :  { %v1347_v58 = vmul.f32 0.7978846, %v1344_v53  ;;  %v1339_v59 = vmul.f32 %v1336_v36, %v1324_v50 }
 0xae7   :  { %v1328_v5 = vpop.f32.mrb[28].mxu0 }
 0xae8   :  { %3742 = vtanh.f32 %v1347_v58  ;;  %v1342_v60 = vmul.f32 %v1339_v59, %v1324_v50  ;;  %v1329_v28 = vadd.f32 %v1328_v5, %v1242_v32  ;;  %v3253_v61 = vpop.f32.mrb[29].mxu0  ;;  %v4447_v32 = vsub.s32 5, %v3928_v25 }
 0xaea   :  { %v1345_v0 = vadd.f32 %v1342_v60, %v1324_v50  ;;  %v1337_v1 = vmul.f32 0.044715, %v1329_v28  ;;  %v1334_v23 = vmul.f32 0.5, %v1329_v28  ;;  %v1374_v33 = vrot.slane %v4039_v63, %v4447_v32 }
 0xaec   :  { %v1340_v2 = vmul.f32 %v1337_v1, %v1329_v28  ;;  %v1348_v3 = vmul.f32 0.7978846, %v1345_v0 }
 0xaee   :  { %v1343_v7 = vmul.f32 %v1340_v2, %v1329_v28  ;;  %3744 = vtanh.f32 %v1348_v3  ;;  %v2811_v3 = vld [vmem:[%s4873_s10 + $0x18] sm:$0xff] }
 0xaf0   :  { %v1346_v52 = vadd.f32 %v1343_v7, %v1329_v28  ;;  %v2812_v7 = vld [vmem:[%s4873_s10 + $0x20] sm:$0xff] }
 0xaf2   :  { %v3743_v54 = vpop.eup %3742  ;;  %v1349_v8 = vmul.f32 0.7978846, %v1346_v52  ;;  %v2813_v52 = vld [vmem:[%s4873_s10 + $0x28] sm:$0xff] }
 0xaf3   :  { %v1353_v13 = vadd.f32 1.0, %v3743_v54 }
 0xaf4   :  { %3746 = vtanh.f32 %v1349_v8 }
 0xaf5   :  { %v1356_v14 = vmul.f32 %v1353_v13, %v1332_v12 }
 0xaf7   :  { %3279 = vmatmul.mubr.msk.f32.vlgmr.msra.gmra.mrb[38].mxu1 %vm1375_vm15, %v1356_v14 }
 0xaf8   :  { %v3745_v15 = vpop.eup %3744  ;;  %3281 = vmatprep.mubr.msk.f32.mxu1 %vm3825_vm2, %v3826_v43 }
 0xaf9   :  { %v1354_v17 = vadd.f32 1.0, %v3745_v15 }
 0xafb   :  { %v1357_v19 = vmul.f32 %v1354_v17, %v1333_v16 }
 0xafd   :  { %3282 = vmatmul.mubr.msk.f32.gmra.mrb[40].mxu1 %vm1375_vm15, %v1357_v19 }
 0xafe   :  { %v3747_v21 = vpop.eup %3746  ;;  %3284 = vmatprep.mubr.msk.f32.mxu1 %vm3825_vm2, %v3826_v43 }
 0xaff   :  { %v1355_v24 = vadd.f32 1.0, %v3747_v21 }
 0xb01   :  { %v1358_v6 = vmul.f32 %v1355_v24, %v1334_v23 }
 0xb03   :  { %3285 = vmatmul.mubr.msk.f32.gmra.mrb[42].mxu1 %vm1375_vm15, %v1358_v6 }
 0xb04   :  { %3353 = vmatprep.mubr.msk.f32.mxu1 %vm3825_vm2, %v3826_v43 }
 0xbca   :  { %v1451_v34 = vpop.f32.mrb[38].mxu1 }
 0xbcb   :  { %v1452_v37 = vadd.f32 %v1451_v34, %v1374_v33  ;;  %v3280_v45 = vpop.f32.mrb[39].mxu1 }
 0xbcd   :  { %v4452_v48 = vadd.f32 %v1452_v37, %v4340_v10 }
 0xbcf   :  { %v1468_v56 = vsel %vm319_vm7, %v4452_v48, 0.0  ;;  %v1480_v49 = vmul.f32 %v4452_v48, %v4452_v48 }
 0xbd0   :  { %1469 = vadd.xlane.f32.xlu0 %v1468_v56  ;;  %v1456_v50 = vpop.f32.mrb[40].mxu1 }
 0xbd1   :  { %v1457_v62 = vadd.f32 %v1456_v50, %v1374_v33  ;;  %v3283_v53 = vpop.f32.mrb[41].mxu1  ;;  %v1483_v36 = vsel %vm319_vm7, %v1480_v49, 0.0 }
 0xbd2   :  { %1484 = vadd.xlane.f32.xlu1 %v1483_v36 }
 0xbd3   :  { %v4460_v58 = vadd.f32 %v1457_v62, %v4347_v47  ;;  %v1516_v62 = vrot.slane %v4039_v63, %v369_v39 }
 0xbd5   :  { %v1471_v10 = vsel %vm319_vm7, %v4460_v58, 0.0  ;;  %v1481_v59 = vmul.f32 %v4460_v58, %v4460_v58 }
 0xbd6   :  { %1472 = vadd.xlane.f32.xlu0 %v1471_v10  ;;  %v1461_v5 = vpop.f32.mrb[42].mxu1 }
 0xbd7   :  { %v1462_v60 = vadd.f32 %v1461_v5, %v1374_v33  ;;  %v3286_v28 = vpop.f32.mrb[43].mxu1  ;;  %v1486_v61 = vsel %vm319_vm7, %v1481_v59, 0.0  ;;  %v1523_v59 = vrot.slane %v4039_v63, %v376_v41 }
 0xbd8   :  { %1487 = vadd.xlane.f32.xlu1 %v1486_v61 }
 0xbd9   :  { %v4468_v0 = vadd.f32 %v1462_v60, %v4355_v35  ;;  %v3584_v35 = vpack.c.bf16 %v2812_v7, %v2811_v3 }
 0xbdb   :  { %v1474_v47 = vsel %vm326_vm8, %v4468_v0, 0.0  ;;  %v1482_v1 = vmul.f32 %v4468_v0, %v4468_v0  ;;  %3585 = vmatpush3.bf16.msra.mxu0 %v3584_v35  ;;  %v4507_v35 = vld [vmem:[%s4871_s8 + $0x10] sm:$0x3f] }
 0xbdc   :  { %1475 = vadd.xlane.f32.xlu0 %v1474_v47  ;;  %3291 = vmatprep.subr.mxu0 %v3826_v43 }
 0xbdd   :  { %v1489_v2 = vsel %vm326_vm8, %v1482_v1, 0.0 }
 0xbde   :  { %1490 = vadd.xlane.f32.xlu1 %v1489_v2 }
 0xbdf   :  { %3292 = vmatpush3.msra.mxu0 %v2813_v52 }
 0xbe0   :  { %3586 = vmatprep.subr.bf16.mxu0 %v3824_v42 }
 0xc5d   :  { %v1470_v54 = vpop.xlane.xlu0 %1469 }
 0xc5e   :  { %v1477_v8 = vmul.f32 0.041666668, %v1470_v54 }
 0xc5f   :  { %v1485_v12 = vpop.xlane.xlu1 %1484 }
 0xc60   :  { %v1498_v13 = vmul.f32 %v1477_v8, %v1477_v8  ;;  %v1492_v14 = vmul.f32 0.041666668, %v1485_v12  ;;  %v1495_v53 = vsub.f32 %v4452_v48, %v1477_v8  ;;  %v1534_v8 = vrot.slane %v4507_v35, %v3954_v44 }
 0xc62   :  { %v1501_v15 = vsub.f32 %v1492_v14, %v1498_v13 }
 0xc63   :  { %v1473_v16 = vpop.xlane.xlu0 %1472 }
 0xc64   :  { %v1504_v17 = vadd.f32 1e-06, %v1501_v15  ;;  %v1478_v19 = vmul.f32 0.041666668, %v1473_v16 }
 0xc65   :  { %v1488_v21 = vpop.xlane.xlu1 %1487 }
 0xc66   :  { %3748 = vrsqrt.f32 %v1504_v17  ;;  %v1499_v23 = vmul.f32 %v1478_v19, %v1478_v19  ;;  %v1493_v24 = vmul.f32 0.041666668, %v1488_v21  ;;  %v1496_v28 = vsub.f32 %v4460_v58, %v1478_v19 }
 0xc68   :  { %v1502_v6 = vsub.f32 %v1493_v24, %v1499_v23 }
 0xc69   :  { %v1476_v33 = vpop.xlane.xlu0 %1475 }
 0xc6a   :  { %v1505_v34 = vadd.f32 1e-06, %v1502_v6  ;;  %v1479_v37 = vmul.f32 0.041666668, %v1476_v33 }
 0xc6b   :  { %v1491_v45 = vpop.xlane.xlu1 %1490 }
 0xc6c   :  { %3750 = vrsqrt.f32 %v1505_v34  ;;  %v1500_v56 = vmul.f32 %v1479_v37, %v1479_v37  ;;  %v1494_v49 = vmul.f32 0.041666668, %v1491_v45  ;;  %v1497_v2 = vsub.f32 %v4468_v0, %v1479_v37  ;;  %v3784_v34 = vld [vmem:[%s4867_s4] sm:$0xff]  ;;  %v3785_v37 = vld [vmem:[%s4867_s4 + $0x8] sm:$0xff]  ;;  %v3786_v45 = vld [vmem:[%s4867_s4 + $0x10] sm:$0xff] }
 0xc6e   :  { %v1503_v50 = vsub.f32 %v1494_v49, %v1500_v56  ;;  %v3792_v56 = vld [vmem:[%s4867_s4 + $0x40] sm:$0xff] }
 0xc70   :  { %v3749_v36 = vpop.eup %3748  ;;  %v1506_v10 = vadd.f32 1e-06, %v1503_v50 }
 0xc71   :  { %v1510_v5 = vmul.f32 %v3749_v36, %v1495_v53  ;;  %v3793_v53 = vld [vmem:[%s4868_s5] sm:$0xff] }
 0xc72   :  { %3752 = vrsqrt.f32 %v1506_v10  ;;  %v3794_v10 = vld [vmem:[%s4868_s5 + $0x8] sm:$0xff] }
 0xc73   :  { %v1517_v60 = vmul.f32 %v1516_v62, %v1510_v5 }
 0xc75   :  { %v1524_v61 = vadd.f32 %v1523_v59, %v1517_v60 }
 0xc76   :  { %v3751_v47 = vpop.eup %3750 }
 0xc77   :  { %3294 = vmatmul.mubr.msk.f32.vlgmr.msra.gmra.mrb[30].mxu0 %vm319_vm7, %v1524_v61  ;;  %v1511_v1 = vmul.f32 %v3751_v47, %v1496_v28 }
 0xc78   :  { %3296 = vmatprep.mubr.msk.f32.mxu0 %vm3825_vm2, %v3826_v43 }
 0xc79   :  { %v1518_v39 = vmul.f32 %v1516_v62, %v1511_v1 }
 0xc7b   :  { %v1525_v3 = vadd.f32 %v1523_v59, %v1518_v39  ;;  %v3795_v39 = vld [vmem:[%s4868_s5 + $0x10] sm:$0xff] }
 0xc7c   :  { %v3753_v25 = vpop.eup %3752 }
 0xc7d   :  { %3297 = vmatmul.mubr.msk.f32.gmra.mrb[32].mxu0 %vm319_vm7, %v1525_v3  ;;  %v1512_v41 = vmul.f32 %v3753_v25, %v1497_v2  ;;  %v3796_v3 = vld [vmem:[%s4868_s5 + $0x18] sm:$0xff] }
 0xc7e   :  { %3299 = vmatprep.mubr.msk.f32.mxu0 %vm3825_vm2, %v3826_v43 }
 0xc7f   :  { %v1519_v63 = vmul.f32 %v1516_v62, %v1512_v41 }
 0xc81   :  { %v1526_v7 = vadd.f32 %v1523_v59, %v1519_v63 }
 0xc83   :  { %3300 = vmatmul.mubr.msk.f32.gmra.mrb[34].mxu0 %vm319_vm7, %v1526_v7 }
 0xc84   :  { %3308 = vmatprep.mubr.msk.f32.mxu0 %vm3825_vm2, %v3826_v43 }
 0xd4a   :  { %v1610_v52 = vpop.f32.mrb[30].mxu0 }
 0xd4b   :  { %v3295_v54 = vpop.f32.mrb[31].mxu0  ;;  %v4511_v13 = vadd.f32 %v1610_v52, %v1534_v8 }
 0xd50   :  { %v1615_v12 = vpop.f32.mrb[32].mxu0 }
 0xd51   :  { %v4513_v14 = vadd.f32 %v1615_v12, %v1534_v8  ;;  %v3298_v15 = vpop.f32.mrb[33].mxu0  ;;  %v3797_v12 = vld [vmem:[%s4868_s5 + $0x20] sm:$0xff] }
 0xd53   :  { %v3689_v16 = vpack.i.bf16 %v4513_v14, %v4511_v13  ;;  %v1625_v38 = vmul.f32 0.4082483, %v4513_v14 }
 0xd55   :  { %3690 = vrot.lane.b32.xlu0 %v3689_v16, %s3828_s27  ;;  %v3798_v16 = vld [vmem:[%s4868_s5 + $0x28] sm:$0xff] }
 0xd56   :  { %v1620_v17 = vpop.f32.mrb[34].mxu0 }
 0xd57   :  { %v4518_v19 = vadd.f32 %v1620_v17, %v1534_v8  ;;  %v3301_v21 = vpop.f32.mrb[35].mxu0 }
 0xd59   :  { %1634 = vrot.lane.b32.xlu1 %v4518_v19, %s3828_s27 }
 0xdc7   :  { %v3691_v23 = vpop.permute.xlu0 %3690 }
 0xdc8   :  { %v3693_v44 = vunpack.i.h.bf16 %v3691_v23  ;;  %v3692_v24 = vunpack.i.l.bf16 %v3691_v23 }
 0xdca   :  { %v3587_v6 = vpack.c.bf16 %v3693_v44, %v3692_v24 }
 0xdcb   :  { %v1635_v33 = vpop.permute.xlu1 %1634 }
 0xdcc   :  { %3588 = vmatpush3.bf16.msra.mxu0 %v3587_v6 }
 0xdcd   :  { %3306 = vmatprep.subr.mxu0 %v3826_v43 }
 0xdd0   :  { %3307 = vmatpush3.msk.msra.mxu0 %vm204_vm3, %v1635_v33  ;;  %vm2739_vm3 = vcmask 122880  }
 0xdd1   :  { %3309 = vmatmul.mubr.msk.f32.vlgmr.msra.gmra.mrb[36].mxu0 %vm491_vm9, %v3784_v34  ;;  %3605 = vmatprep.subr.bf16.mxu0 %v3824_v42 }
 0xdd2   :  { %3311 = vmatprep.mubr.msk.f32.mxu0 %vm3825_vm2, %v3826_v43  ;;  %3607 = vmatpush3.bf16.msra.mxu0 %v4204_v30  ;;  %v3787_v30 = vld [vmem:[%s4867_s4 + $0x18] sm:$0xff] }
 0xdd3   :  { %3608 = vmatprep.subr.bf16.mxu0 %v3824_v42 }
 0xdd5   :  { %3312 = vmatmul.mubr.msk.f32.gmra.mrb[38].mxu0 %vm491_vm9, %v3785_v37 }
 0xdd6   :  { %3314 = vmatprep.mubr.msk.f32.mxu0 %vm3825_vm2, %v3826_v43  ;;  %3610 = vmatpush3.bf16.msra.mxu0 %v4210_v31  ;;  %v3788_v31 = vld [vmem:[%s4867_s4 + $0x20] sm:$0xff] }
 0xdd7   :  { %3611 = vmatprep.subr.bf16.mxu0 %v3824_v42 }
 0xdd9   :  { %3315 = vmatmul.mubr.msk.f32.gmra.mrb[40].mxu0 %vm491_vm9, %v3786_v45 }
 0xdda   :  { %3317 = vmatprep.mubr.msk.f32.mxu0 %vm3825_vm2, %v3826_v43  ;;  %3613 = vmatpush3.bf16.msra.mxu0 %v4228_v55  ;;  %v3789_v55 = vld [vmem:[%s4867_s4 + $0x28] sm:$0xff] }
 0xddb   :  { %3614 = vmatprep.subr.bf16.mxu0 %v3824_v42 }
 0xddd   :  { %3318 = vmatmul.mubr.msk.f32.gmra.mrb[42].mxu0 %vm491_vm9, %v3787_v30 }
 0xdde   :  { %3320 = vmatprep.mubr.msk.f32.mxu0 %vm3825_vm2, %v3826_v43  ;;  %3616 = vmatpush3.bf16.msra.mxu0 %v4239_v40  ;;  %v3790_v40 = vld [vmem:[%s4867_s4 + $0x30] sm:$0xff] }
 0xddf   :  { %3378 = vmatprep.subr.mxu0 %v3826_v43 }
 0xde1   :  { %3321 = vmatmul.mubr.msk.f32.gmra.mrb[44].mxu0 %vm491_vm9, %v3788_v31 }
 0xde2   :  { %3323 = vmatprep.mubr.msk.f32.mxu0 %vm3825_vm2, %v3826_v43  ;;  %3379 = vmatpush3.msra.mxu0 %v4248_v57  ;;  %v3791_v57 = vld [vmem:[%s4867_s4 + $0x38] sm:$0xff] }
 0xde3   :  { %3617 = vmatprep.subr.bf16.mxu0 %v3824_v42 }
 0xde5   :  { %3324 = vmatmul.mubr.msk.f32.gmra.mrb[46].mxu0 %vm491_vm9, %v3789_v55 }
 0xde6   :  { %3326 = vmatprep.mubr.msk.f32.mxu0 %vm3825_vm2, %v3826_v43 }
 0xde9   :  { %3327 = vmatmul.mubr.msk.f32.gmra.mrb[48].mxu0 %vm491_vm9, %v3790_v40 }
 0xdea   :  { %3329 = vmatprep.mubr.msk.f32.mxu0 %vm3825_vm2, %v3826_v43 }
 0xded   :  { %3330 = vmatmul.mubr.msk.f32.gmra.mrb[50].mxu0 %vm491_vm9, %v3791_v57 }
 0xdee   :  { %3332 = vmatprep.mubr.msk.f32.mxu0 %vm3825_vm2, %v3826_v43 }
 0xdf1   :  { %3333 = vmatmul.mubr.msk.f32.gmra.mrb[52].mxu0 %vm491_vm9, %v3792_v56  ;;  %v1624_v56 = vmul.f32 0.4082483, %v4511_v13 }
 0xdf2   :  { %3380 = vmatprep.mubr.msk.f32.mxu0 %vm3825_vm2, %v3826_v43 }
 0xea4   :  { %v1706_v49 = vpop.f32.mrb[36].mxu0 }
 0xea5   :  { %v3310_v50 = vpop.f32.mrb[37].mxu0  ;;  %v4592_v36 = vmul.f32 %v3793_v53, %v1706_v49 }
 0xea8   :  { %v1711_v62 = vpop.f32.mrb[38].mxu0 }
 0xea9   :  { %v4597_v59 = vmul.f32 %v3794_v10, %v1711_v62  ;;  %v3313_v5 = vpop.f32.mrb[39].mxu0 }
 0xeab   :  { %v3694_v60 = vpack.i.bf16 %v4597_v59, %v4592_v36  ;;  %v3590_v28 = vpack.c.bf16 %v4597_v59, %v4592_v36 }
 0xeac   :  { %v1716_v61 = vpop.f32.mrb[40].mxu0 }
 0xead   :  { %3592 = vmatpush3.bf16.xpose.msk.msra.mxu1 %vm4123_vm10, %v3590_v28  ;;  %v3316_v47 = vpop.f32.mrb[41].mxu0  ;;  %v1752_v2 = vmul.f32 %v3795_v39, %v1716_v61 }
 0xeae   :  { %3593 = vmatprep.subr.bf16.mxu1 %v3824_v42 }
 0xeb0   :  { %v1721_v1 = vpop.f32.mrb[42].mxu0 }
 0xeb1   :  { %v1753_v25 = vmul.f32 %v3796_v3, %v1721_v1  ;;  %v3319_v41 = vpop.f32.mrb[43].mxu0 }
 0xeb3   :  { %v3699_v63 = vpack.i.bf16 %v1753_v25, %v1752_v2  ;;  %v3594_v7 = vpack.c.bf16 %v1753_v25, %v1752_v2 }
 0xeb4   :  { %v1726_v52 = vpop.f32.mrb[44].mxu0 }
 0xeb5   :  { %3596 = vmatpush3.bf16.xpose.msk.msra.mxu1 %vm4123_vm10, %v3594_v7  ;;  %v3322_v54 = vpop.f32.mrb[45].mxu0  ;;  %v1754_v15 = vmul.f32 %v3797_v12, %v1726_v52 }
 0xeb6   :  { %3597 = vmatprep.subr.bf16.mxu1 %v3824_v42 }
 0xeb8   :  { %v1731_v8 = vpop.f32.mrb[46].mxu0 }
 0xeb9   :  { %v1755_v17 = vmul.f32 %v3798_v16, %v1731_v8  ;;  %v3325_v21 = vpop.f32.mrb[47].mxu0 }
 0xebb   :  { %v3704_v23 = vpack.i.bf16 %v1755_v17, %v1754_v15  ;;  %v3598_v44 = vpack.c.bf16 %v1755_v17, %v1754_v15 }
 0xebc   :  { %v1736_v24 = vpop.f32.mrb[48].mxu0 }
 0xebd   :  { %3600 = vmatpush3.bf16.xpose.msk.msra.mxu1 %vm4123_vm10, %v3598_v44  ;;  %v3328_v6 = vpop.f32.mrb[49].mxu0  ;;  %v1756_v34 = vmul.f32 %v1736_v24, %v4162_v9  ;;  %v1626_v9 = vmul.f32 0.4082483, %v4518_v19 }
 0xebe   :  { %3601 = vmatprep.subr.bf16.mxu1 %v3824_v42 }
 0xec0   :  { %v1741_v33 = vpop.f32.mrb[50].mxu0 }
 0xec1   :  { %v1757_v37 = vmul.f32 %v1741_v33, %v4167_v11  ;;  %v3331_v45 = vpop.f32.mrb[51].mxu0 }
 0xec3   :  { %v3709_v30 = vpack.i.bf16 %v1757_v37, %v1756_v34  ;;  %v3602_v31 = vpack.c.bf16 %v1757_v37, %v1756_v34 }
 0xec4   :  { %v1746_v55 = vpop.f32.mrb[52].mxu0 }
 0xec5   :  { %3604 = vmatpush3.bf16.xpose.msk.msra.mxu1 %vm4123_vm10, %v3602_v31  ;;  %v3334_v40 = vpop.f32.mrb[53].mxu0  ;;  %v1758_v57 = vmul.f32 %v1746_v55, %v4177_v20  ;;  %v2850_v31 = vld [vmem:[%s4874_s11 + $0x20] sm:$0xff] }
 0xec6   :  { %3351 = vmatprep.subr.mxu1 %v3826_v43 }
 0xecd   :  { %3352 = vmatpush3.xpose.msk.msra.mxu1 %vm319_vm7, %v1758_v57 }
 0xece   :  { %3389 = vmatprep.subr.mxu1 %v3826_v43 }
 0xed0   :  { %3354 = vmatmul.mubr.msk.f32.vlgmr.msra.gmra.mrb[44].mxu1 %vm319_vm7, %v1624_v56 }
 0xed1   :  { %3356 = vmatprep.mubr.msk.f32.mxu1 %vm3825_vm2, %v3826_v43  ;;  %3390 = vmatpush3.msk.msra.mxu1 %vm881_vm13, %v4300_v46 }
 0xed2   :  { %3629 = vmatprep.subr.bf16.mxu1 %v3824_v42 }
 0xed4   :  { %3357 = vmatmul.mubr.msk.f32.gmra.mrb[46].mxu1 %vm319_vm7, %v1625_v38 }
 0xed5   :  { %3359 = vmatprep.mubr.msk.f32.mxu1 %vm3825_vm2, %v3826_v43 }
 0xed8   :  { %3360 = vmatmul.mubr.msk.f32.gmra.mrb[48].mxu1 %vm319_vm7, %v1626_v9 }
 0xed9   :  { %3391 = vmatprep.mubr.msk.f32.mxu1 %vm3825_vm2, %v3826_v43 }
 0xfa3   :  { %v1861_v11 = vpop.f32.mrb[44].mxu1 }
 0xfa4   :  { %v3355_v20 = vpop.f32.mrb[45].mxu1  ;;  %v1875_v46 = vsel %vm756_vm11, %v1861_v11, -inf }
 0xfa5   :  { %1876 = vmax.xlane.f32.xlu1 %v1875_v46 }
 0xfa7   :  { %v1866_v13 = vpop.f32.mrb[46].mxu1 }
 0xfa8   :  { %v3358_v14 = vpop.f32.mrb[47].mxu1  ;;  %v1878_v49 = vsel %vm756_vm11, %v1866_v13, -inf }
 0xfa9   :  { %1879 = vmax.xlane.f32.xlu0 %v1878_v49 }
 0xfab   :  { %v1871_v50 = vpop.f32.mrb[48].mxu1 }
 0xfac   :  { %v3361_v62 = vpop.f32.mrb[49].mxu1  ;;  %v1881_v53 = vsel %vm763_vm12, %v1871_v50, -inf }
 0xfad   :  { %1882 = vmax.xlane.f32.xlu0 %v1881_v53 }
 0xfb6   :  { %3695 = vrot.lane.b32.xlu1 %v3694_v60, %s3828_s27 }
 0xfba   :  { %3705 = vrot.lane.b32.xlu1 %v3704_v23, %s3828_s27 }
 0xfbe   :  { %3710 = vrot.lane.b32.xlu1 %v3709_v30, %s3828_s27  ;;  %v2849_v30 = vld [vmem:[%s4874_s11 + $0x18] sm:$0xff] }
 0xfc2   :  { %2093 = vrot.lane.b32.xlu1 %v1758_v57, %s3828_s27  ;;  %v3630_v57 = vpack.c.bf16 %v2850_v31, %v2849_v30 }
 0xfc3   :  { %3700 = vrot.lane.b32.xlu0 %v3699_v63, %s3828_s27 }
0x1032   :  { %v1877_v19 = vpop.xlane.xlu1 %1876 }
0x1033   :  { %v1884_v10 = vsub.f32 %v1861_v11, %v1877_v19 }
0x1035   :  { %v1887_v5 = vmul.f32 1.442695, %v1884_v10 }
0x1036   :  { %v1880_v28 = vpop.xlane.xlu0 %1879  ;;  %v3696_v36 = vpop.permute.xlu1 %3695 }
0x1037   :  { %3754 = vpow2.f32 %v1887_v5  ;;  %v1885_v61 = vsub.f32 %v1866_v13, %v1880_v28  ;;  %v3698_v60 = vunpack.i.h.bf16 %v3696_v36  ;;  %v3697_v2 = vunpack.i.l.bf16 %v3696_v36 }
0x1039   :  { %v1889_v47 = vmul.f32 1.442695, %v1885_v61  ;;  %v3618_v7 = vpack.c.bf16 %v3698_v60, %v3697_v2 }
0x103a   :  { %v1883_v1 = vpop.xlane.xlu0 %1882  ;;  %v3706_v63 = vpop.permute.xlu1 %3705 }
0x103b   :  { %3756 = vpow2.f32 %v1889_v47  ;;  %v1886_v39 = vsub.f32 %v1871_v50, %v1883_v1  ;;  %v3708_v15 = vunpack.i.h.bf16 %v3706_v63  ;;  %v3707_v16 = vunpack.i.l.bf16 %v3706_v63  ;;  %v2851_v50 = vld [vmem:[%s4874_s11 + $0x28] sm:$0xff] }
0x103d   :  { %v1891_v59 = vmul.f32 1.442695, %v1886_v39  ;;  %v3624_v44 = vpack.c.bf16 %v3708_v15, %v3707_v16  ;;  %v2286_v39 = vrot.slane %v4507_v35, %v4335_v22 }
0x103e   :  { %v3701_v3 = vpop.permute.xlu0 %3700  ;;  %v3711_v21 = vpop.permute.xlu1 %3710 }
0x103f   :  { %3758 = vpow2.f32 %v1891_v59  ;;  %v3703_v52 = vunpack.i.h.bf16 %v3701_v3  ;;  %v3702_v54 = vunpack.i.l.bf16 %v3701_v3  ;;  %v3713_v24 = vunpack.i.h.bf16 %v3711_v21 }
0x1040   :  { %v3712_v6 = vunpack.i.l.bf16 %v3711_v21 }
0x1041   :  { %v3755_v25 = vpop.eup %3754  ;;  %v3621_v17 = vpack.c.bf16 %v3703_v52, %v3702_v54 }
0x1042   :  { %v1893_v41 = vmul.f32 %v3755_v25, %v4259_v51  ;;  %v2094_v33 = vpop.permute.xlu1 %2093 }
0x1044   :  { %3381 = vmatmul.mubr.msk.f32.vlgmr.msra.gmra.mrb[54].mxu0 %vm756_vm11, %v1893_v41 }
0x1045   :  { %v3757_v8 = vpop.eup %3756  ;;  %3619 = vmatpush3.bf16.msra.mxu0 %v3618_v7  ;;  %3383 = vmatprep.mubr.msk.f32.mxu0 %vm3825_vm2, %v3826_v43 }
0x1046   :  { %3620 = vmatprep.subr.bf16.mxu0 %v3824_v42  ;;  %v1894_v12 = vmul.f32 %v3757_v8, %v4265_v18  ;;  %v3627_v18 = vpack.c.bf16 %v3713_v24, %v3712_v6  ;;  %v2857_v6 = vld [vmem:[%s4875_s12 + $0x28] sm:$0xff] }
0x1048   :  { %3384 = vmatmul.mubr.msk.f32.gmra.mrb[56].mxu0 %vm756_vm11, %v1894_v12 }
0x1049   :  { %v3759_v51 = vpop.eup %3758  ;;  %3622 = vmatpush3.bf16.msra.mxu0 %v3621_v17  ;;  %3386 = vmatprep.mubr.msk.f32.mxu0 %vm3825_vm2, %v3826_v43 }
0x104a   :  { %3623 = vmatprep.subr.bf16.mxu0 %v3824_v42  ;;  %v1895_v23 = vmul.f32 %v3759_v51, %v4275_v4 }
0x104c   :  { %3387 = vmatmul.mubr.msk.f32.gmra.mrb[58].mxu0 %vm756_vm11, %v1895_v23 }
0x104d   :  { %3625 = vmatpush3.bf16.msra.mxu0 %v3624_v44  ;;  %3418 = vmatprep.mubr.msk.f32.mxu0 %vm3825_vm2, %v3826_v43  ;;  %v2856_v44 = vld [vmem:[%s4875_s12 + $0x20] sm:$0xff] }
0x104e   :  { %3626 = vmatprep.subr.bf16.mxu0 %v3824_v42 }
0x1051   :  { %3628 = vmatpush3.bf16.msra.mxu0 %v3627_v18 }
0x1052   :  { %3416 = vmatprep.subr.mxu0 %v3826_v43 }
0x1055   :  { %3417 = vmatpush3.msra.mxu0 %v2094_v33 }
0x1056   :  { %3419 = vmatmul.mubr.msk.f32.vlgmr.msra.gmra.mrb[60].mxu0 %vm756_vm11, %v1893_v41  ;;  %3635 = vmatprep.subr.bf16.mxu0 %v3824_v42 }
0x1057   :  { %3421 = vmatprep.mubr.msk.f32.mxu0 %vm3825_vm2, %v3826_v43 }
0x105a   :  { %3422 = vmatmul.mubr.msk.f32.gmra.mrb[62].mxu0 %vm756_vm11, %v1894_v12 }
0x105b   :  { %3424 = vmatprep.mubr.msk.f32.mxu0 %vm3825_vm2, %v3826_v43 }
0x105e   :  { %3425 = vmatmul.mubr.msk.f32.gmra.mrb[64].mxu0 %vm756_vm11, %v1895_v23  ;;  %v2855_v23 = vld [vmem:[%s4875_s12 + $0x18] sm:$0xff] }
0x105f   :  { %3481 = vmatprep.mubr.msk.f32.mxu0 %vm3825_vm2, %v3826_v43  ;;  %v3633_v24 = vpack.c.bf16 %v2856_v44, %v2855_v23  ;;  %v2870_v23 = vld [vmem:[%s4876_s13 + $0xa8] sm:$0xff] }
0x1117   :  { %v1971_v4 = vpop.f32.mrb[54].mxu0 }
0x1118   :  { %3760 = vrcp.f32 %v1971_v4  ;;  %v3382_v34 = vpop.f32.mrb[55].mxu0 }
0x111b   :  { %v1976_v37 = vpop.f32.mrb[56].mxu0 }
0x111c   :  { %3762 = vrcp.f32 %v1976_v37  ;;  %v3385_v45 = vpop.f32.mrb[57].mxu0 }
0x111f   :  { %v1981_v55 = vpop.f32.mrb[58].mxu0 }
0x1120   :  { %3764 = vrcp.f32 %v1981_v55  ;;  %v3388_v40 = vpop.f32.mrb[59].mxu0 }
0x1122   :  { %v3761_v56 = vpop.eup %3760 }
0x1123   :  { %3392 = vmatmul.mubr.msk.f32.vlgmr.msra.gmra.mrb[50].mxu1 %vm871_vm14, %v3761_v56 }
0x1124   :  { %3394 = vmatprep.mubr.msk.f32.mxu1 %vm3825_vm2, %v3826_v43  ;;  %3631 = vmatpush3.bf16.msra.mxu1 %v3630_v57 }
0x1125   :  { %3431 = vmatprep.subr.mxu1 %v3826_v43 }
0x1126   :  { %v3763_v38 = vpop.eup %3762 }
0x1127   :  { %3395 = vmatmul.mubr.msk.f32.gmra.mrb[52].mxu1 %vm871_vm14, %v3763_v38 }
0x1128   :  { %3397 = vmatprep.mubr.msk.f32.mxu1 %vm3825_vm2, %v3826_v43  ;;  %3432 = vmatpush3.msra.mxu1 %v2851_v50 }
0x1129   :  { %v2170_v9 = vpop.f32.mrb[60].mxu0  ;;  %3632 = vmatprep.subr.bf16.mxu1 %v3824_v42 }
0x112a   :  { %v3765_v11 = vpop.eup %3764  ;;  %v3420_v20 = vpop.f32.mrb[61].mxu0 }
0x112b   :  { %3398 = vmatmul.mubr.msk.f32.gmra.mrb[54].mxu1 %vm871_vm14, %v3765_v11 }
0x112c   :  { %3433 = vmatprep.mubr.msk.f32.mxu1 %vm3825_vm2, %v3826_v43 }
0x112d   :  { %v2175_v46 = vpop.f32.mrb[62].mxu0 }
0x112e   :  { %v3423_v13 = vpop.f32.mrb[63].mxu0 }
0x1131   :  { %v2180_v14 = vpop.f32.mrb[64].mxu0 }
0x1132   :  { %v3426_v49 = vpop.f32.mrb[65].mxu0 }
0x11f6   :  { %v2063_v62 = vpop.f32.mrb[50].mxu1 }
0x11f7   :  { %v2184_v53 = vmul.f32 %v2170_v9, %v2063_v62  ;;  %v3393_v19 = vpop.f32.mrb[51].mxu1  ;;  %v2338_v62 = vrot.slane %v4507_v35, %v3931_v27 }
0x11f9   :  { %3434 = vmatmul.mubr.msk.f32.vlgmr.msra.gmra.mrb[56].mxu1 %vm319_vm7, %v2184_v53 }
0x11fa   :  { %v2068_v10 = vpop.f32.mrb[52].mxu1  ;;  %3436 = vmatprep.mubr.msk.f32.mxu1 %vm3825_vm2, %v3826_v43  ;;  %3634 = vmatpush3.bf16.msra.mxu1 %v3633_v24  ;;  %v2871_v24 = vld [vmem:[%s4876_s13 + $0xb0] sm:$0xff] }
0x11fb   :  { %v2185_v5 = vmul.f32 %v2175_v46, %v2068_v10  ;;  %v3396_v28 = vpop.f32.mrb[53].mxu1  ;;  %3446 = vmatprep.subr.mxu1 %v3826_v43  ;;  %v2345_v10 = vrot.slane %v4507_v35, %v3939_v29 }
0x11fd   :  { %3437 = vmatmul.mubr.msk.f32.gmra.mrb[58].mxu1 %vm319_vm7, %v2185_v5 }
0x11fe   :  { %v2073_v61 = vpop.f32.mrb[54].mxu1  ;;  %3439 = vmatprep.mubr.msk.f32.mxu1 %vm3825_vm2, %v3826_v43  ;;  %3447 = vmatpush3.msra.mxu1 %v2857_v6  ;;  %v2872_v6 = vld [vmem:[%s4876_s13 + $0xb8] sm:$0xff] }
0x11ff   :  { %v2186_v47 = vmul.f32 %v2180_v14, %v2073_v61  ;;  %v3399_v1 = vpop.f32.mrb[55].mxu1  ;;  %3653 = vmatprep.subr.bf16.mxu1 %v3824_v42 }
0x1201   :  { %3440 = vmatmul.mubr.msk.f32.gmra.mrb[60].mxu1 %vm319_vm7, %v2186_v47 }
0x1202   :  { %3448 = vmatprep.mubr.msk.f32.mxu1 %vm3825_vm2, %v3826_v43 }
0x12cc   :  { %v2266_v36 = vpop.f32.mrb[56].mxu1 }
0x12cd   :  { %v2280_v59 = vadd.f32 %v2266_v36, %v4452_v48  ;;  %v3435_v60 = vpop.f32.mrb[57].mxu1 }
0x12cf   :  { %v4716_v2 = vadd.f32 %v2286_v39, %v2280_v59 }
0x12d0   :  { %v2271_v3 = vpop.f32.mrb[58].mxu1 }
0x12d1   :  { %v2281_v25 = vadd.f32 %v2271_v3, %v4460_v58  ;;  %v3438_v41 = vpop.f32.mrb[59].mxu1  ;;  %v2290_v63 = vsel %vm319_vm7, %v4716_v2, 0.0  ;;  %v2302_v7 = vmul.f32 %v4716_v2, %v4716_v2 }
0x12d2   :  { %2291 = vadd.xlane.f32.xlu0 %v2290_v63  ;;  %v2861_v41 = vld [vmem:[%s4876_s13 + $0x60] sm:$0xff]  ;;  %v2862_v63 = vld [vmem:[%s4876_s13 + $0x68] sm:$0xff] }
0x12d3   :  { %v4723_v52 = vadd.f32 %v2286_v39, %v2281_v25  ;;  %v2305_v54 = vsel %vm319_vm7, %v2302_v7, 0.0  ;;  %v3636_v7 = vpack.c.bf16 %v2862_v63, %v2861_v41 }
0x12d4   :  { %2306 = vadd.xlane.f32.xlu1 %v2305_v54  ;;  %v2276_v48 = vpop.f32.mrb[60].mxu1  ;;  %v2863_v54 = vld [vmem:[%s4876_s13 + $0x70] sm:$0xff] }
0x12d5   :  { %v2282_v8 = vadd.f32 %v2276_v48, %v4468_v0  ;;  %v3441_v12 = vpop.f32.mrb[61].mxu1  ;;  %v2293_v58 = vsel %vm319_vm7, %v4723_v52, 0.0  ;;  %v2303_v15 = vmul.f32 %v4723_v52, %v4723_v52  ;;  %3637 = vmatpush3.bf16.msra.mxu0 %v3636_v7  ;;  %v2864_v48 = vld [vmem:[%s4876_s13 + $0x78] sm:$0xff] }
0x12d6   :  { %2294 = vadd.xlane.f32.xlu0 %v2293_v58  ;;  %3638 = vmatprep.subr.bf16.mxu0 %v3824_v42  ;;  %v2865_v12 = vld [vmem:[%s4876_s13 + $0x80] sm:$0xff]  ;;  %v2866_v58 = vld [vmem:[%s4876_s13 + $0x88] sm:$0xff] }
0x12d7   :  { %v4731_v16 = vadd.f32 %v2286_v39, %v2282_v8  ;;  %v2308_v17 = vsel %vm319_vm7, %v2303_v15, 0.0  ;;  %v3639_v8 = vpack.c.bf16 %v2864_v48, %v2863_v54  ;;  %v3642_v15 = vpack.c.bf16 %v2866_v58, %v2865_v12 }
0x12d9   :  { %v2304_v21 = vmul.f32 %v4731_v16, %v4731_v16  ;;  %v2296_v0 = vsel %vm326_vm8, %v4731_v16, 0.0  ;;  %3640 = vmatpush3.bf16.msra.mxu0 %v3639_v8 }
0x12da   :  { %2309 = vadd.xlane.f32.xlu0 %v2308_v17  ;;  %3641 = vmatprep.subr.bf16.mxu0 %v3824_v42  ;;  %v2867_v17 = vld [vmem:[%s4876_s13 + $0x90] sm:$0xff] }
0x12db   :  { %v2311_v51 = vsel %vm326_vm8, %v2304_v21, 0.0  ;;  %v2868_v21 = vld [vmem:[%s4876_s13 + $0x98] sm:$0xff] }
0x12dc   :  { %2312 = vadd.xlane.f32.xlu1 %v2311_v51  ;;  %v3645_v51 = vpack.c.bf16 %v2868_v21, %v2867_v17 }
0x12dd   :  { %3643 = vmatpush3.bf16.msra.mxu0 %v3642_v15 }
0x12de   :  { %2297 = vadd.xlane.f32.xlu0 %v2296_v0  ;;  %3644 = vmatprep.subr.bf16.mxu0 %v3824_v42  ;;  %v2869_v0 = vld [vmem:[%s4876_s13 + $0xa0] sm:$0xff] }
0x12df   :  { %v3648_v44 = vpack.c.bf16 %v2870_v23, %v2869_v0 }
0x12e1   :  { %3646 = vmatpush3.bf16.msra.mxu0 %v3645_v51 }
0x12e2   :  { %3647 = vmatprep.subr.bf16.mxu0 %v3824_v42 }
0x12e5   :  { %3649 = vmatpush3.bf16.msra.mxu0 %v3648_v44 }
0x12e6   :  { %3650 = vmatprep.subr.bf16.mxu0 %v3824_v42 }
0x135f   :  { %v2292_v18 = vpop.xlane.xlu0 %2291 }
0x1360   :  { %v2299_v33 = vmul.f32 0.041666668, %v2292_v18  ;;  %v3651_v18 = vpack.c.bf16 %v2872_v6, %v2871_v24 }
0x1361   :  { %v2307_v4 = vpop.xlane.xlu1 %2306 }
0x1362   :  { %v2320_v34 = vmul.f32 %v2299_v33, %v2299_v33  ;;  %v2314_v37 = vmul.f32 0.041666668, %v2307_v4  ;;  %v2317_v50 = vsub.f32 %v4716_v2, %v2299_v33  ;;  %3652 = vmatpush3.bf16.msra.mxu0 %v3651_v18  ;;  %v2356_v33 = vrot.slane %v4507_v35, %v4433_v26 }
0x1363   :  { %v2295_v45 = vpop.xlane.xlu0 %2294 }
0x1364   :  { %v2323_v30 = vsub.f32 %v2314_v37, %v2320_v34  ;;  %v2300_v31 = vmul.f32 0.041666668, %v2295_v45 }
0x1366   :  { %v2326_v55 = vadd.f32 1e-06, %v2323_v30  ;;  %v2321_v57 = vmul.f32 %v2300_v31, %v2300_v31  ;;  %v2318_v61 = vsub.f32 %v4723_v52, %v2300_v31 }
0x1367   :  { %v2310_v40 = vpop.xlane.xlu0 %2309 }
0x1368   :  { %3766 = vrsqrt.f32 %v2326_v55  ;;  %v2315_v56 = vmul.f32 0.041666668, %v2310_v40 }
0x1369   :  { %v2313_v9 = vpop.xlane.xlu1 %2312 }
0x136a   :  { %v2324_v38 = vsub.f32 %v2315_v56, %v2321_v57  ;;  %v2316_v13 = vmul.f32 0.041666668, %v2313_v9 }
0x136b   :  { %v2298_v11 = vpop.xlane.xlu0 %2297 }
0x136c   :  { %v2327_v20 = vadd.f32 1e-06, %v2324_v38  ;;  %v2301_v46 = vmul.f32 0.041666668, %v2298_v11 }
0x136e   :  { %3768 = vrsqrt.f32 %v2327_v20  ;;  %v2322_v14 = vmul.f32 %v2301_v46, %v2301_v46  ;;  %v2319_v27 = vsub.f32 %v4731_v16, %v2301_v46 }
0x1370   :  { %v2325_v49 = vsub.f32 %v2316_v13, %v2322_v14 }
0x1372   :  { %v3767_v53 = vpop.eup %3766  ;;  %v2328_v19 = vadd.f32 1e-06, %v2325_v49 }
0x1373   :  { %v2332_v5 = vmul.f32 %v3767_v53, %v2317_v50 }
0x1374   :  { %3770 = vrsqrt.f32 %v2328_v19 }
0x1375   :  { %v2339_v28 = vmul.f32 %v2338_v62, %v2332_v5 }
0x1377   :  { %v2346_v47 = vadd.f32 %v2345_v10, %v2339_v28 }
0x1378   :  { %v3769_v1 = vpop.eup %3768 }
0x1379   :  { %3449 = vmatmul.mubr.msk.f32.vlgmr.msra.gmra.mrb[62].mxu1 %vm319_vm7, %v2346_v47  ;;  %v2333_v39 = vmul.f32 %v3769_v1, %v2318_v61 }
0x137a   :  { %3451 = vmatprep.mubr.msk.f32.mxu1 %vm3825_vm2, %v3826_v43 }
0x137b   :  { %v2340_v36 = vmul.f32 %v2338_v62, %v2333_v39 }
0x137d   :  { %v2347_v59 = vadd.f32 %v2345_v10, %v2340_v36 }
0x137e   :  { %v3771_v60 = vpop.eup %3770 }
0x137f   :  { %v2334_v3 = vmul.f32 %v3771_v60, %v2319_v27  ;;  %3452 = vmatmul.mubr.msk.f32.gmra.mrb[64].mxu1 %vm319_vm7, %v2347_v59 }
0x1380   :  { %3454 = vmatprep.mubr.msk.f32.mxu1 %vm3825_vm2, %v3826_v43 }
0x1381   :  { %v2341_v29 = vmul.f32 %v2338_v62, %v2334_v3 }
0x1383   :  { %v2348_v25 = vadd.f32 %v2345_v10, %v2341_v29 }
0x1385   :  { %3455 = vmatmul.mubr.msk.f32.gmra.mrb[66].mxu1 %vm319_vm7, %v2348_v25  ;;  %v2489_v25 = vrot.slane %v4507_v35, %v4447_v32 }
0x1386   :  { %3496 = vmatprep.mubr.msk.f32.mxu1 %vm3825_vm2, %v3826_v43 }
0x144c   :  { %v2432_v4 = vpop.f32.mrb[62].mxu1 }
0x144d   :  { %v2433_v34 = vadd.f32 %v2432_v4, %v2356_v33  ;;  %v3450_v37 = vpop.f32.mrb[63].mxu1  ;;  %v2642_v4 = vld [vmem:[%s4877_s14 + $0x8] sm:$0xff] }
0x144f   :  { %v2449_v45 = vmul.f32 0.044715, %v2433_v34  ;;  %v2446_v28 = vmul.f32 0.5, %v2433_v34 }
0x1451   :  { %v2452_v30 = vmul.f32 %v2449_v45, %v2433_v34 }
0x1452   :  { %v2437_v31 = vpop.f32.mrb[64].mxu1 }
0x1453   :  { %v2455_v42 = vmul.f32 %v2452_v30, %v2433_v34  ;;  %v2438_v55 = vadd.f32 %v2437_v31, %v2356_v33  ;;  %v3453_v40 = vpop.f32.mrb[65].mxu1 }
0x1455   :  { %v2458_v57 = vadd.f32 %v2455_v42, %v2433_v34  ;;  %v2450_v56 = vmul.f32 0.044715, %v2438_v55  ;;  %v2447_v39 = vmul.f32 0.5, %v2438_v55 }
0x1457   :  { %v2461_v38 = vmul.f32 0.7978846, %v2458_v57  ;;  %v2453_v9 = vmul.f32 %v2450_v56, %v2438_v55 }
0x1458   :  { %v2442_v11 = vpop.f32.mrb[66].mxu1 }
0x1459   :  { %3772 = vtanh.f32 %v2461_v38  ;;  %v2456_v20 = vmul.f32 %v2453_v9, %v2438_v55  ;;  %v2443_v46 = vadd.f32 %v2442_v11, %v2356_v33  ;;  %v3456_v13 = vpop.f32.mrb[67].mxu1 }
0x145b   :  { %v2459_v14 = vadd.f32 %v2456_v20, %v2438_v55  ;;  %v2451_v49 = vmul.f32 0.044715, %v2443_v46  ;;  %v2448_v60 = vmul.f32 0.5, %v2443_v46 }
0x145d   :  { %v2454_v50 = vmul.f32 %v2451_v49, %v2443_v46  ;;  %v2462_v62 = vmul.f32 0.7978846, %v2459_v14 }
0x145f   :  { %v2457_v53 = vmul.f32 %v2454_v50, %v2443_v46  ;;  %3774 = vtanh.f32 %v2462_v62 }
0x1461   :  { %v2460_v19 = vadd.f32 %v2457_v53, %v2443_v46 }
0x1463   :  { %v3773_v10 = vpop.eup %3772  ;;  %v2463_v5 = vmul.f32 0.7978846, %v2460_v19  ;;  %v3799_v19 = vld [vmem:[%s4871_s8] sm:$0xff]  ;;  %s3829_s8 = smov [#allocation2]  }
0x1464   :  { %v2467_v61 = vadd.f32 1.0, %v3773_v10  ;;  %v2630_v10 = vrot.slane %v3799_v19, %v4335_v22  ;;  %s2750_s3 = sshll.u32 %s3829_s8, 4  ;;  %s2751_s3 = int_to_ptr.vmem [resolvable:$true] %s2750_s3 }
0x1465   :  { %3776 = vtanh.f32 %v2463_v5  ;;  %s3800_s18 = scalar_lea.vmem %s2751_s3, 256  ;;  %p3805_p1 = scmp.lt.s32.totalorder %s2751_s3, %s2751_s3 }
0x1466   :  { %v2470_v47 = vmul.f32 %v2467_v61, %v2446_v28  ;;  %p3801_p0 = scmp.ne.s32.totalorder %s2751_s3, %s3800_s18  ;;  %p3806_p2 = scmp.lt.s32.totalorder %s3800_s18, %s3800_s18 }
0x1468   :  { %3482 = vmatmul.mubr.msk.f32.vlgmr.msra.gmra.mrb[66].mxu0 %vm1375_vm15, %v2470_v47  ;;  %v2637_v47 = vrot.slane %v3799_v19, %v4433_v26  ;;  %p3807_p3 = por %p3806_p2, %p3805_p1 }
0x1469   :  { %v3775_v1 = vpop.eup %3774  ;;  %3484 = vmatprep.mubr.msk.f32.mxu0 %vm3825_vm2, %v3826_v43 }
0x146a   :  { %v2468_v36 = vadd.f32 1.0, %v3775_v1  ;;  %p3808_p4 = pnand %p3807_p3, %p3801_p0 }
0x146c   :  { %v2471_v27 = vmul.f32 %v2468_v36, %v2447_v39 }
0x146e   :  { %3485 = vmatmul.mubr.msk.f32.gmra.mrb[68].mxu0 %vm1375_vm15, %v2471_v27 }
0x146f   :  { %v3777_v59 = vpop.eup %3776  ;;  %3487 = vmatprep.mubr.msk.f32.mxu0 %vm3825_vm2, %v3826_v43 }
0x1470   :  { %v2469_v3 = vadd.f32 1.0, %v3777_v59 }
0x1472   :  { %v2472_v29 = vmul.f32 %v2469_v3, %v2448_v60 }
0x1474   :  { %3488 = vmatmul.mubr.msk.f32.gmra.mrb[70].mxu0 %vm1375_vm15, %v2472_v29 }
0x153b   :  { %v2565_v41 = vpop.f32.mrb[66].mxu0 }
0x153c   :  { %v2566_v63 = vadd.f32 %v2565_v41, %v2489_v25  ;;  %v3483_v7 = vpop.f32.mrb[67].mxu0 }
0x153d   :  { %v2647_v7 = vrot.slane %v3799_v19, %v4447_v32 }
0x153e   :  { %v2579_v54 = vadd.f32 %v2566_v63, %v4716_v2 }
0x1540   :  { %v2582_v48 = vsel %vm319_vm7, %v2579_v54, 0.0  ;;  %v2594_v8 = vmul.f32 %v2579_v54, %v2579_v54 }
0x1541   :  { %2583 = vadd.xlane.f32.xlu0 %v2582_v48  ;;  %v2570_v12 = vpop.f32.mrb[68].mxu0 }
0x1542   :  { %v2571_v58 = vadd.f32 %v2570_v12, %v2489_v25  ;;  %v3486_v15 = vpop.f32.mrb[69].mxu0  ;;  %v2597_v17 = vsel %vm319_vm7, %v2594_v8, 0.0 }
0x1543   :  { %2598 = vadd.xlane.f32.xlu1 %v2597_v17 }
0x1544   :  { %v2580_v21 = vadd.f32 %v2571_v58, %v4723_v52  ;;  %v2641_v52 = vld [vmem:[%s4877_s14] sm:$0xff] }
0x1545   :  { %v3654_v34 = vpack.c.bf16 %v2642_v4, %v2641_v52 }
0x1546   :  { %v2585_v51 = vsel %vm319_vm7, %v2580_v21, 0.0  ;;  %v2595_v35 = vmul.f32 %v2580_v21, %v2580_v21 }
0x1547   :  { %2586 = vadd.xlane.f32.xlu0 %v2585_v51  ;;  %v2575_v0 = vpop.f32.mrb[70].mxu0  ;;  %3655 = vmatpush3.bf16.msra.mxu1 %v3654_v34 }
0x1548   :  { %v2576_v23 = vadd.f32 %v2575_v0, %v2489_v25  ;;  %v3489_v44 = vpop.f32.mrb[71].mxu0  ;;  %v2600_v2 = vsel %vm319_vm7, %v2595_v35, 0.0  ;;  %3494 = vmatprep.subr.mxu1 %v3826_v43 }
0x1549   :  { %2601 = vadd.xlane.f32.xlu1 %v2600_v2 }
0x154a   :  { %v2581_v24 = vadd.f32 %v2576_v23, %v4731_v16  ;;  %v2643_v16 = vld [vmem:[%s4877_s14 + $0x10] sm:$0xff] }
0x154b   :  { %3495 = vmatpush3.msra.mxu1 %v2643_v16 }
0x154c   :  { %v2588_v6 = vsel %vm326_vm8, %v2581_v24, 0.0  ;;  %v2596_v18 = vmul.f32 %v2581_v24, %v2581_v24 }
0x154d   :  { %2589 = vadd.xlane.f32.xlu0 %v2588_v6 }
0x154e   :  { %v2603_v33 = vsel %vm326_vm8, %v2596_v18, 0.0 }
0x154f   :  { %2604 = vadd.xlane.f32.xlu1 %v2603_v33 }
0x15ce   :  { %v2584_v37 = vpop.xlane.xlu0 %2583 }
0x15cf   :  { %v2591_v45 = vmul.f32 0.041666668, %v2584_v37 }
0x15d0   :  { %v2599_v30 = vpop.xlane.xlu1 %2598 }
0x15d1   :  { %v2612_v31 = vmul.f32 %v2591_v45, %v2591_v45  ;;  %v2606_v42 = vmul.f32 0.041666668, %v2599_v30  ;;  %v2609_v5 = vsub.f32 %v2579_v54, %v2591_v45 }
0x15d3   :  { %v2615_v55 = vsub.f32 %v2606_v42, %v2612_v31 }
0x15d4   :  { %v2587_v40 = vpop.xlane.xlu0 %2586 }
0x15d5   :  { %v2618_v57 = vadd.f32 1e-06, %v2615_v55  ;;  %v2592_v56 = vmul.f32 0.041666668, %v2587_v40 }
0x15d6   :  { %v2602_v38 = vpop.xlane.xlu1 %2601 }
0x15d7   :  { %3778 = vrsqrt.f32 %v2618_v57  ;;  %v2613_v9 = vmul.f32 %v2592_v56, %v2592_v56  ;;  %v2607_v11 = vmul.f32 0.041666668, %v2602_v38  ;;  %v2610_v36 = vsub.f32 %v2580_v21, %v2592_v56 }
0x15d9   :  { %v2616_v20 = vsub.f32 %v2607_v11, %v2613_v9 }
0x15da   :  { %v2590_v46 = vpop.xlane.xlu0 %2589 }
0x15db   :  { %v2619_v13 = vadd.f32 1e-06, %v2616_v20  ;;  %v2593_v14 = vmul.f32 0.041666668, %v2590_v46 }
0x15dc   :  { %v2605_v49 = vpop.xlane.xlu1 %2604 }
0x15dd   :  { %3780 = vrsqrt.f32 %v2619_v13  ;;  %v2614_v50 = vmul.f32 %v2593_v14, %v2593_v14  ;;  %v2608_v62 = vmul.f32 0.041666668, %v2605_v49  ;;  %v2611_v29 = vsub.f32 %v2581_v24, %v2593_v14 }
0x15df   :  { %v2617_v53 = vsub.f32 %v2608_v62, %v2614_v50 }
0x15e1   :  { %v3779_v28 = vpop.eup %3778  ;;  %v2620_v61 = vadd.f32 1e-06, %v2617_v53 }
0x15e2   :  { %v2624_v1 = vmul.f32 %v3779_v28, %v2609_v5 }
0x15e3   :  { %3782 = vrsqrt.f32 %v2620_v61 }
0x15e4   :  { %v2631_v39 = vmul.f32 %v2630_v10, %v2624_v1 }
0x15e6   :  { %v2638_v27 = vadd.f32 %v2637_v47, %v2631_v39 }
0x15e7   :  { %v3781_v59 = vpop.eup %3780 }
0x15e8   :  { %3497 = vmatmul.mubr.msk.f32.vlgmr.msra.gmra.mrb[68].mxu1 %vm319_vm7, %v2638_v27  ;;  %v2625_v60 = vmul.f32 %v3781_v59, %v2610_v36 }
0x15e9   :  { %3499 = vmatprep.mubr.msk.f32.mxu1 %vm3825_vm2, %v3826_v43 }
0x15ea   :  { %v2632_v3 = vmul.f32 %v2630_v10, %v2625_v60 }
0x15ec   :  { %v2639_v22 = vadd.f32 %v2637_v47, %v2632_v3 }
0x15ed   :  { %v3783_v25 = vpop.eup %3782 }
0x15ee   :  { %3500 = vmatmul.mubr.msk.f32.gmra.mrb[70].mxu1 %vm319_vm7, %v2639_v22  ;;  %v2626_v41 = vmul.f32 %v3783_v25, %v2611_v29 }
0x15ef   :  { %3502 = vmatprep.mubr.msk.f32.mxu1 %vm3825_vm2, %v3826_v43 }
0x15f0   :  { %v2633_v26 = vmul.f32 %v2630_v10, %v2626_v41 }
0x15f2   :  { %v2640_v63 = vadd.f32 %v2637_v47, %v2633_v26 }
0x15f4   :  { %3503 = vmatmul.mubr.msk.f32.gmra.mrb[72].mxu1 %vm319_vm7, %v2640_v63 }
0x16bb   :  { %v2723_v54 = vpop.f32.mrb[68].mxu1 }
0x16bc   :  { %v2724_v48 = vadd.f32 %v2723_v54, %v2647_v7  ;;  %v3498_v8 = vpop.f32.mrb[69].mxu1 }
0x16be   :  { %2738 = vst.msk [vmem:[#allocation2 - $0x1] sm:$0xfe] %vm2737_vm0, %v2724_v48 }
0x16c1   :  { %v2728_v12 = vpop.f32.mrb[70].mxu1 }
0x16c2   :  { %v2729_v58 = vadd.f32 %v2728_v12, %v2647_v7  ;;  %v3501_v15 = vpop.f32.mrb[71].mxu1 }
0x16c4   :  { %2740 = vst.msk [vmem:[#allocation2 + $0x7] sm:$0x1] %vm2739_vm3, %v2729_v58 }
0x16c5   :  { %2743 = vst.msk [vmem:[#allocation2 + $0x6] sm:$0xfc] %vm2742_vm4, %v2729_v58 }
0x16c7   :  { %v2733_v43 = vpop.f32.mrb[72].mxu1 }
0x16c8   :  { %v2734_v17 = vadd.f32 %v2733_v43, %v2647_v7  ;;  %v3504_v21 = vpop.f32.mrb[73].mxu1 }
0x16ca   :  { %2744 = vst.msk [vmem:[#allocation2 + $0xe] sm:$0x3] %vm60_vm1, %v2734_v17 }
0x16cb   :  { %3811 = shalt.err (!%p3808_p4)
}
0x16cc   :  { %s3812_s4 = scalar_lea.hbm %s4878_s15, 256 }
0x16cd   :  { %p3813_p5 = scmp.ne.s32.totalorder %s4878_s15, %s3812_s4  ;;  %p3816_p6 = scmp.lt.u32.totalorder %s3812_s4, %s4878_s15 }
0x16cf   :  { %p3818_p7 = pnand %p3816_p6, %p3813_p5 }
0x16d1   :  { %3821 = shalt.err (!%p3818_p7)
}
0x16d2   :  { %s3830_s2 = smov 128   ;;  %s3831_s22 = smov 8  }
0x16d3   :  { %2756 = dma.vmem_to_hbm [thread:$0]  %s2751_s3, 256, %s4878_s15, [#allocation3], %s3830_s2, %s3830_s2, %s3831_s22  }
0x16d4   :  { %3822 = dma.done.wait [#allocation3], 256  }
0x16d5   :  { %3823 = vsyncadd [#allocation3], 4294967040 }
0x16d6   :  { %2760 = vsyncpa [#allocation3], 1 }

</bundles_post_ra>
